<compile_context>
chip_gen: v6e
topology: v6e:2x2x1
jax: 0.10.0
libtpu: 0.0.40
codegen_flags: <defaults>
</compile_context>

<pallas_src>
import functools

import jax
import jax.numpy as jnp
from jax.experimental import pallas as pl
from jax.experimental.pallas import tpu as pltpu


TM = 128     # node-row tile (sublane-friendly, lane-dense output blocks)
LANE = 128   # hidden/class widths padded (independently) to a multiple of this


def _round_up(x, m):
    return (x + m - 1) // m * m


def _pad2(a, rows, cols):
    return jnp.pad(a, ((0, rows - a.shape[0]), (0, cols - a.shape[1])))


def _vmem_limit_bytes():
    """Raise the scoped-VMEM limit toward physical capacity (default is 16/32 MiB)."""
    try:
        cap = pltpu.get_tpu_info().vmem_capacity_bytes
    except Exception:
        cap = 64 * 1024 * 1024          # conservative fallback (v7x per-TC physical VMEM)
    return int(cap * 7 // 8)            # leave headroom for compiler-internal scratch


# ----------------------------------------------------------------------------
# Pallas kernels — one grid step = one TM-row tile of nodes
# ----------------------------------------------------------------------------
def gcn_hidden_layer_kernel(*refs, apply_weight):
    """o_tile = ReLU(Ahat_tile @ H_prev [@ W] + b)   (eval BatchNorm folded into W/b)."""
    if apply_weight:
        ahat_ref, h_ref, w_ref, b_ref, o_ref = refs
    else:
        ahat_ref, h_ref, b_ref, o_ref = refs
    # Aggregation: (TM, n_pad) x (n_pad, d) bf16 operands, f32 MXU accumulation.
    t = jnp.dot(ahat_ref[...], h_ref[...], preferred_element_type=jnp.float32)
    if apply_weight:
        # Reassociated feature transform: (Ahat_tile @ H_prev) @ W  (same FLOPs as
        # Ahat @ (H @ W) but no full-matrix serial prologue / scratch buffer).
        t = jnp.dot(t.astype(w_ref.dtype), w_ref[...],
                    preferred_element_type=jnp.float32)
    o_ref[...] = jnp.maximum(t + b_ref[...], 0.0).astype(o_ref.dtype)


def gcn_final_layer_kernel(ahat_ref, h_ref, w_ref, b_ref, ln_g_ref, ln_b_ref,
                           o_ref, *, num_classes):
    """o_tile = log_softmax(LayerNorm((Ahat_tile @ H_prev) @ W + b)), masked to classes."""
    t = jnp.dot(ahat_ref[...], h_ref[...], preferred_element_type=jnp.float32)
    h = jnp.dot(t.astype(w_ref.dtype), w_ref[...],
                preferred_element_type=jnp.float32) + b_ref[...]

    ln_g = ln_g_ref[...]
    ln_b = ln_b_ref[...]
    width = h.shape[1]
    if num_classes == width:
        # No padding lanes — unmasked fast path.
        mu = jnp.mean(h, axis=1, keepdims=True)
        d = h - mu
        var = jnp.mean(d * d, axis=1, keepdims=True)
        hn = d * jax.lax.rsqrt(var + 1e-5) * ln_g + ln_b
        m = jnp.max(hn, axis=1, keepdims=True)
        lse = jnp.log(jnp.sum(jnp.exp(hn - m), axis=1, keepdims=True))
        o_ref[...] = hn - m - lse
    else:
        mask = jax.lax.broadcasted_iota(jnp.int32, h.shape, 1) < num_classes
        cnt = jnp.float32(num_classes)
        mu = jnp.sum(jnp.where(mask, h, 0.0), axis=1, keepdims=True) / cnt
        d = jnp.where(mask, h - mu, 0.0)
        var = jnp.sum(d * d, axis=1, keepdims=True) / cnt
        hn = (h - mu) * jax.lax.rsqrt(var + 1e-5) * ln_g + ln_b
        z = jnp.where(mask, hn, jnp.float32(-1e30))
        m = jnp.max(z, axis=1, keepdims=True)
        e = jnp.where(mask, jnp.exp(z - m), 0.0)
        lse = jnp.log(jnp.sum(e, axis=1, keepdims=True))
        o_ref[...] = jnp.where(mask, hn - m - lse, 0.0)


def _gcn_layer_call(kernel, ahat_p, dense_inputs, dense_specs, out_width, out_dtype,
                    vmem_limit):
    """One GCN layer: stream Ahat row tiles, keep the small dense operands resident."""
    n_pad = ahat_p.shape[0]
    in_specs = [pl.BlockSpec((TM, n_pad), lambda i: (i, 0))] + list(dense_specs)
    return pl.pallas_call(
        kernel,
        out_shape=jax.ShapeDtypeStruct((n_pad, out_width), out_dtype),
        grid_spec=pltpu.PrefetchScalarGridSpec(
            num_scalar_prefetch=0,
            grid=(n_pad // TM,),
            in_specs=in_specs,
            out_specs=pl.BlockSpec((TM, out_width), lambda i: (i, 0)),
        ),
        compiler_params=pltpu.CompilerParams(
            dimension_semantics=("parallel",),        # row tiles independent -> megacore
            vmem_limit_bytes=vmem_limit,
        ),
    )(ahat_p, *dense_inputs)


# ----------------------------------------------------------------------------
# Glue: normalized adjacency, wrapper, reference, parameter init
# ----------------------------------------------------------------------------
def build_norm_adj(edge_index, num_nodes):
    """Dense D^-1/2 (A + I) D^-1/2 as used by GCNConv (add_self_loops=True)."""
    src, dst = edge_index[0], edge_index[1]
    loop = jnp.arange(num_nodes, dtype=src.dtype)
    src = jnp.concatenate([src, loop])
    dst = jnp.concatenate([dst, loop])
    deg = jnp.zeros((num_nodes,), jnp.float32).at[dst].add(1.0)
    dinv = jnp.where(deg > 0, jax.lax.rsqrt(deg), 0.0)
    norm = dinv[src] * dinv[dst]
    ahat = jnp.zeros((num_nodes, num_nodes), jnp.float32).at[dst, src].add(norm)
    return ahat


@functools.partial(jax.jit, static_argnames=("num_nodes",))
def gcn_forward(x, edge_index, params, *, num_nodes):
    hidden = params["w1"].shape[1]
    num_classes = params["w3"].shape[1]

    n_pad = _round_up(num_nodes, TM)
    d_hid = _round_up(hidden, LANE)        # decoupled from the raw feature width
    d_cls = _round_up(num_classes, LANE)   # narrow final epilogue / output

    vmem_limit = _vmem_limit_bytes()

    ahat = build_norm_adj(edge_index, num_nodes)
    ahat_p = _pad2(ahat, n_pad, n_pad).astype(jnp.bfloat16)

    # --- fold eval-mode BatchNorm (+ conv bias) into the layer weights (all linear) ---
    s1 = params["g1"] * jax.lax.rsqrt(params["v1"] + 1e-5)
    s2 = params["g2"] * jax.lax.rsqrt(params["v2"] + 1e-5)
    w1f = params["w1"] * s1
    b1f = (params["b1"] - params["m1"]) * s1 + params["be1"]
    w2f = params["w2"] * s2
    b2f = (params["b2"] - params["m2"]) * s2 + params["be2"]
    w3f, b3f = params["w3"], params["b3"]

    # Layer-1 feature transform X @ W1' is done once by XLA (f32), killing the in-kernel
    # full-matrix XW pipeline bubble and keeping the feature width out of the kernels.
    xw1 = _pad2((x @ w1f).astype(jnp.bfloat16), n_pad, d_hid)

    w2p = _pad2(w2f, d_hid, d_hid).astype(jnp.bfloat16)
    w3p = _pad2(w3f, d_hid, d_cls).astype(jnp.bfloat16)
    b1p = _pad2(b1f, 1, d_hid).astype(jnp.float32)
    b2p = _pad2(b2f, 1, d_hid).astype(jnp.float32)
    b3p = _pad2(b3f, 1, d_cls).astype(jnp.float32)
    ln_g = _pad2(params["g3"], 1, d_cls).astype(jnp.float32)
    ln_b = _pad2(params["be3"], 1, d_cls).astype(jnp.float32)

    # ---- layer 1: H1 = ReLU(Ahat @ XW1 + b1')                      (BN folded)
    h1 = _gcn_layer_call(
        functools.partial(gcn_hidden_layer_kernel, apply_weight=False),
        ahat_p,
        (xw1, b1p),
        [pl.BlockSpec((n_pad, d_hid), lambda i: (0, 0)),
         pl.BlockSpec((1, d_hid), lambda i: (0, 0))],
        d_hid, jnp.bfloat16, vmem_limit)

    # ---- layer 2: H2 = ReLU((Ahat @ H1) @ W2' + b2')               (BN folded)
    h2 = _gcn_layer_call(
        functools.partial(gcn_hidden_layer_kernel, apply_weight=True),
        ahat_p,
        (h1, w2p, b2p),
        [pl.BlockSpec((n_pad, d_hid), lambda i: (0, 0)),
         pl.BlockSpec((d_hid, d_hid), lambda i: (0, 0)),
         pl.BlockSpec((1, d_hid), lambda i: (0, 0))],
        d_hid, jnp.bfloat16, vmem_limit)

    # ---- layer 3: out = log_softmax(LayerNorm((Ahat @ H2) @ W3 + b3))
    out_pad = _gcn_layer_call(
        functools.partial(gcn_final_layer_kernel, num_classes=num_classes),
        ahat_p,
        (h2, w3p, b3p, ln_g, ln_b),
        [pl.BlockSpec((n_pad, d_hid), lambda i: (0, 0)),
         pl.BlockSpec((d_hid, d_cls), lambda i: (0, 0)),
         pl.BlockSpec((1, d_cls), lambda i: (0, 0)),
         pl.BlockSpec((1, d_cls), lambda i: (0, 0)),
         pl.BlockSpec((1, d_cls), lambda i: (0, 0))],
        d_cls, jnp.float32, vmem_limit)

    return out_pad[:num_nodes, :num_classes]


def gcn_reference(x, ahat, params):
    """Pure-JAX f32 reference with the original (unfolded) eval semantics."""
    def bn(h, g, be, m, v):
        return (h - m) * jax.lax.rsqrt(v + 1e-5) * g + be
    h = ahat @ (x @ params["w1"]) + params["b1"]
    h = jnp.maximum(bn(h, params["g1"], params["be1"], params["m1"], params["v1"]), 0.0)
    h = ahat @ (h @ params["w2"]) + params["b2"]
    h = jnp.maximum(bn(h, params["g2"], params["be2"], params["m2"], params["v2"]), 0.0)
    h = ahat @ (h @ params["w3"]) + params["b3"]
    mu = jnp.mean(h, axis=1, keepdims=True)
    var = jnp.mean((h - mu) ** 2, axis=1, keepdims=True)
    h = (h - mu) * jax.lax.rsqrt(var + 1e-5) * params["g3"] + params["be3"]
    return jax.nn.log_softmax(h, axis=1)


def init_params(key, num_features, num_classes, hidden):
    ks = jax.random.split(key, 12)

    def glorot(k, fan_in, fan_out):
        lim = jnp.sqrt(6.0 / (fan_in + fan_out))
        return jax.random.uniform(k, (fan_in, fan_out), jnp.float32, -lim, lim)

    params = {
        "w1": glorot(ks[0], num_features, hidden),
        "b1": jnp.zeros((1, hidden), jnp.float32),
        "w2": glorot(ks[1], hidden, hidden),
        "b2": jnp.zeros((1, hidden), jnp.float32),
        "w3": glorot(ks[2], hidden, num_classes),
        "b3": jnp.zeros((1, num_classes), jnp.float32),
        # BatchNorm 1 (eval stats, deterministic but non-trivial)
        "g1": 1.0 + 0.1 * jax.random.normal(ks[3], (1, hidden)),
        "be1": 0.1 * jax.random.normal(ks[4], (1, hidden)),
        "m1": 0.1 * jax.random.normal(ks[5], (1, hidden)),
        "v1": 1.0 + 0.1 * jax.random.uniform(ks[6], (1, hidden)),
        # BatchNorm 2
        "g2": 1.0 + 0.1 * jax.random.normal(ks[7], (1, hidden)),
        "be2": 0.1 * jax.random.normal(ks[8], (1, hidden)),
        "m2": 0.1 * jax.random.normal(ks[9], (1, hidden)),
        "v2": 1.0 + 0.1 * jax.random.uniform(ks[10], (1, hidden)),
        # LayerNorm
        "g3": jnp.ones((1, num_classes), jnp.float32),
        "be3": jnp.zeros((1, num_classes), jnp.float32),
    }
    return jax.tree.map(lambda a: a.astype(jnp.float32), params)


# ----------------------------------------------------------------------------
# Main
# ----------------------------------------------------------------------------
if __name__ == "__main__":
    key = jax.random.PRNGKey(0)
    k_x, k_e, k_p = jax.random.split(key, 3)

    NUM_NODES = 16
    NUM_FEATURES = 8
    HIDDEN = 32
    NUM_CLASSES = 8
    NUM_EDGES = 40

    x = jax.random.normal(k_x, (NUM_NODES, NUM_FEATURES), jnp.float32)
    edge_index = jax.random.randint(k_e, (2, NUM_EDGES), 0, NUM_NODES, jnp.int32)
    params = init_params(k_p, NUM_FEATURES, NUM_CLASSES, HIDDEN)

    out = gcn_forward(x, edge_index, params, num_nodes=NUM_NODES)
    out = jax.block_until_ready(out)

    assert out.shape == (NUM_NODES, NUM_CLASSES)
    # log_softmax rows must exponentiate-sum to ~1 (epilogue is f32 -> tight)
    assert bool(jnp.allclose(jnp.sum(jnp.exp(out), axis=1), 1.0, atol=1e-4))
    # match the f32 reference (bf16 matmul operands -> loose tolerance)
    ref = gcn_reference(x, build_norm_adj(edge_index, NUM_NODES), params)
    assert bool(jnp.allclose(out, ref, atol=0.2)), float(jnp.max(jnp.abs(out - ref)))

    print("KERNEL_OK")
</pallas_src>

<mosaic_0001>
module attributes {stable_mosaic.version = 11 : i64} {
  func.func private @main(%arg0: i32) attributes {dimension_semantics = [#tpu.dimension_semantics<core_parallel>], iteration_bounds = array<i64: 2>, tpu.core_type = #tpu.core_type<sc_scalar_subcore>, window_params = []} {
    return
  }
}

module attributes {stable_mosaic.version = 11 : i64} {
  func.func private @main(%arg0: i32) attributes {dimension_semantics = [#tpu.dimension_semantics<core_parallel>], iteration_bounds = array<i64: 2>, tpu.core_type = #tpu.core_type<sc_scalar_subcore>, window_params = []} {
    return
  }
}

module attributes {stable_mosaic.version = 11 : i64} {
  func.func @gcn_hidden_layer_kernel(%arg0: i32, %arg1: memref<128x128xbf16, #tpu.memory_space<vmem>>, %arg2: memref<128x128xbf16, #tpu.memory_space<vmem>>, %arg3: memref<1x128xf32, #tpu.memory_space<vmem>>, %arg4: memref<128x128xbf16, #tpu.memory_space<vmem>>) attributes {dimension_semantics = [#tpu.dimension_semantics<parallel>], iteration_bounds = array<i64: 1>, scalar_prefetch = 0 : i64, scratch_operands = 0 : i64, tpu.core_type = #tpu.core_type<tc>, window_params = [{transform_indices = @transform_0, window_bounds = array<i64: 128, 128>}, {pipeline_mode = #tpu.pipeline_mode<synchronous>, transform_indices = @transform_1, window_bounds = array<i64: 128, 128>}, {pipeline_mode = #tpu.pipeline_mode<synchronous>, transform_indices = @transform_2, window_bounds = array<i64: 1, 128>}, {transform_indices = @transform_3, window_bounds = array<i64: 128, 128>}]} {
    %c0 = arith.constant 0 : index
    %c0_0 = arith.constant 0 : index
    %0 = vector.load %arg1[%c0, %c0_0] : memref<128x128xbf16, #tpu.memory_space<vmem>>, vector<128x128xbf16>
    %c0_1 = arith.constant 0 : index
    %c0_2 = arith.constant 0 : index
    %1 = vector.load %arg2[%c0_1, %c0_2] : memref<128x128xbf16, #tpu.memory_space<vmem>>, vector<128x128xbf16>
    %cst = arith.constant dense<0.000000e+00> : vector<128x128xf32>
    %2 = tpu.matmul %0, %1, %cst {dimension_numbers = #tpu.dot_dimension_numbers<[1], [0], [0], [1], [0, 0, 1, 1], [], []>} : vector<128x128xbf16>, vector<128x128xbf16>, vector<128x128xf32> -> vector<128x128xf32>
    %c0_3 = arith.constant 0 : index
    %c0_4 = arith.constant 0 : index
    %3 = vector.load %arg3[%c0_3, %c0_4] : memref<1x128xf32, #tpu.memory_space<vmem>>, vector<1x128xf32>
    %4 = vector.broadcast %3 : vector<1x128xf32> to vector<128x128xf32>
    %5 = arith.addf %2, %4 : vector<128x128xf32>
    %cst_5 = arith.constant 0.000000e+00 : f32
    %6 = vector.broadcast %cst_5 : f32 to vector<128x128xf32>
    %7 = arith.maximumf %5, %6 : vector<128x128xf32>
    %8 = arith.truncf %7 : vector<128x128xf32> to vector<128x128xbf16>
    %c0_6 = arith.constant 0 : index
    %c0_7 = arith.constant 0 : index
    %9 = vector.load %arg4[%c0_6, %c0_7] : memref<128x128xbf16, #tpu.memory_space<vmem>>, vector<128x128xbf16>
    tpu.vector_store %arg4[%c0_6, %c0_7], %8 {strides = array<i32>} : memref<128x128xbf16, #tpu.memory_space<vmem>>, vector<128x128xbf16>,
    return
  }
  func.func @transform_0(%arg0: i32) -> (i32, i32) {
    %c0_i32 = arith.constant 0 : i32
    %c0_i32_0 = arith.constant 0 : i32
    return %arg0, %c0_i32 : i32, i32
  }
  func.func @transform_1(%arg0: i32) -> (i32, i32) {
    %c0_i32 = arith.constant 0 : i32
    %c0_i32_0 = arith.constant 0 : i32
    %c0_i32_1 = arith.constant 0 : i32
    return %c0_i32, %c0_i32_0 : i32, i32
  }
  func.func @transform_2(%arg0: i32) -> (i32, i32) {
    %c0_i32 = arith.constant 0 : i32
    %c0_i32_0 = arith.constant 0 : i32
    %c0_i32_1 = arith.constant 0 : i32
    return %c0_i32, %c0_i32_0 : i32, i32
  }
  func.func @transform_3(%arg0: i32) -> (i32, i32) {
    %c0_i32 = arith.constant 0 : i32
    %c0_i32_0 = arith.constant 0 : i32
    return %arg0, %c0_i32 : i32, i32
  }
}

module attributes {stable_mosaic.version = 11 : i64} {
  func.func @gcn_final_layer_kernel(%arg0: i32, %arg1: memref<128x128xbf16, #tpu.memory_space<vmem>>, %arg2: memref<128x128xbf16, #tpu.memory_space<vmem>>, %arg3: memref<128x128xbf16, #tpu.memory_space<vmem>>, %arg4: memref<1x128xf32, #tpu.memory_space<vmem>>, %arg5: memref<1x128xf32, #tpu.memory_space<vmem>>, %arg6: memref<1x128xf32, #tpu.memory_space<vmem>>, %arg7: memref<128x128xf32, #tpu.memory_space<vmem>>) attributes {dimension_semantics = [#tpu.dimension_semantics<parallel>], iteration_bounds = array<i64: 1>, scalar_prefetch = 0 : i64, scratch_operands = 0 : i64, tpu.core_type = #tpu.core_type<tc>, window_params = [{transform_indices = @transform_0, window_bounds = array<i64: 128, 128>}, {pipeline_mode = #tpu.pipeline_mode<synchronous>, transform_indices = @transform_1, window_bounds = array<i64: 128, 128>}, {pipeline_mode = #tpu.pipeline_mode<synchronous>, transform_indices = @transform_2, window_bounds = array<i64: 128, 128>}, {pipeline_mode = #tpu.pipeline_mode<synchronous>, transform_indices = @transform_3, window_bounds = array<i64: 1, 128>}, {pipeline_mode = #tpu.pipeline_mode<synchronous>, transform_indices = @transform_4, window_bounds = array<i64: 1, 128>}, {pipeline_mode = #tpu.pipeline_mode<synchronous>, transform_indices = @transform_5, window_bounds = array<i64: 1, 128>}, {transform_indices = @transform_6, window_bounds = array<i64: 128, 128>}]} {
    %c0 = arith.constant 0 : index
    %c0_0 = arith.constant 0 : index
    %0 = vector.load %arg1[%c0, %c0_0] : memref<128x128xbf16, #tpu.memory_space<vmem>>, vector<128x128xbf16>
    %c0_1 = arith.constant 0 : index
    %c0_2 = arith.constant 0 : index
    %1 = vector.load %arg2[%c0_1, %c0_2] : memref<128x128xbf16, #tpu.memory_space<vmem>>, vector<128x128xbf16>
    %cst = arith.constant dense<0.000000e+00> : vector<128x128xf32>
    %2 = tpu.matmul %0, %1, %cst {dimension_numbers = #tpu.dot_dimension_numbers<[1], [0], [0], [1], [0, 0, 1, 1], [], []>} : vector<128x128xbf16>, vector<128x128xbf16>, vector<128x128xf32> -> vector<128x128xf32>
    %3 = arith.truncf %2 : vector<128x128xf32> to vector<128x128xbf16>
    %c0_3 = arith.constant 0 : index
    %c0_4 = arith.constant 0 : index
    %4 = vector.load %arg3[%c0_3, %c0_4] : memref<128x128xbf16, #tpu.memory_space<vmem>>, vector<128x128xbf16>
    %cst_5 = arith.constant dense<0.000000e+00> : vector<128x128xf32>
    %5 = tpu.matmul %3, %4, %cst_5 {dimension_numbers = #tpu.dot_dimension_numbers<[1], [0], [0], [1], [0, 0, 1, 1], [], []>} : vector<128x128xbf16>, vector<128x128xbf16>, vector<128x128xf32> -> vector<128x128xf32>
    %c0_6 = arith.constant 0 : index
    %c0_7 = arith.constant 0 : index
    %6 = vector.load %arg4[%c0_6, %c0_7] : memref<1x128xf32, #tpu.memory_space<vmem>>, vector<1x128xf32>
    %7 = vector.broadcast %6 : vector<1x128xf32> to vector<128x128xf32>
    %8 = arith.addf %5, %7 : vector<128x128xf32>
    %c0_8 = arith.constant 0 : index
    %c0_9 = arith.constant 0 : index
    %9 = vector.load %arg5[%c0_8, %c0_9] : memref<1x128xf32, #tpu.memory_space<vmem>>, vector<1x128xf32>
    %c0_10 = arith.constant 0 : index
    %c0_11 = arith.constant 0 : index
    %10 = vector.load %arg6[%c0_10, %c0_11] : memref<1x128xf32, #tpu.memory_space<vmem>>, vector<1x128xf32>
    %11 = tpu.iota {dimensions = array<i32: 1>} : vector<128x128xi32>
    %c8_i32 = arith.constant 8 : i32
    %12 = vector.broadcast %c8_i32 : i32 to vector<128x128xi32>
    %13 = arith.cmpi slt, %11, %12 : vector<128x128xi32>
    %cst_12 = arith.constant 0.000000e+00 : f32
    %14 = vector.broadcast %cst_12 : f32 to vector<128x128xf32>
    %15 = arith.select %13, %8, %14 : vector<128x128xi1>, vector<128x128xf32>
    %cst_13 = arith.constant dense<0.000000e+00> : vector<128xf32>
    %16 = vector.multi_reduction <add>, %15, %cst_13 [1] : vector<128x128xf32> to vector<128xf32>
    %17 = vector.shape_cast %16 : vector<128xf32> to vector<128x1xf32>
    %cst_14 = arith.constant 8.000000e+00 : f32
    %18 = vector.broadcast %cst_14 : f32 to vector<128x1xf32>
    %19 = arith.divf %17, %18 : vector<128x1xf32>
    %20 = vector.broadcast %19 : vector<128x1xf32> to vector<128x128xf32>
    %21 = arith.subf %8, %20 : vector<128x128xf32>
    %cst_15 = arith.constant 0.000000e+00 : f32
    %22 = vector.broadcast %cst_15 : f32 to vector<128x128xf32>
    %23 = arith.select %13, %21, %22 : vector<128x128xi1>, vector<128x128xf32>
    %24 = arith.mulf %23, %23 : vector<128x128xf32>
    %cst_16 = arith.constant dense<0.000000e+00> : vector<128xf32>
    %25 = vector.multi_reduction <add>, %24, %cst_16 [1] : vector<128x128xf32> to vector<128xf32>
    %26 = vector.shape_cast %25 : vector<128xf32> to vector<128x1xf32>
    %cst_17 = arith.constant 8.000000e+00 : f32
    %27 = vector.broadcast %cst_17 : f32 to vector<128x1xf32>
    %28 = arith.divf %26, %27 : vector<128x1xf32>
    %29 = vector.broadcast %19 : vector<128x1xf32> to vector<128x128xf32>
    %30 = arith.subf %8, %29 : vector<128x128xf32>
    %cst_18 = arith.constant 9.99999974E-6 : f32
    %31 = vector.broadcast %cst_18 : f32 to vector<128x1xf32>
    %32 = arith.addf %28, %31 : vector<128x1xf32>
    %33 = math.rsqrt %32 : vector<128x1xf32>
    %34 = vector.broadcast %33 : vector<128x1xf32> to vector<128x128xf32>
    %35 = arith.mulf %30, %34 : vector<128x128xf32>
    %36 = vector.broadcast %9 : vector<1x128xf32> to vector<128x128xf32>
    %37 = arith.mulf %35, %36 : vector<128x128xf32>
    %38 = vector.broadcast %10 : vector<1x128xf32> to vector<128x128xf32>
    %39 = arith.addf %37, %38 : vector<128x128xf32>
    %cst_19 = arith.constant -1.000000e+30 : f32
    %40 = vector.broadcast %cst_19 : f32 to vector<128x128xf32>
    %41 = arith.select %13, %39, %40 : vector<128x128xi1>, vector<128x128xf32>
    %cst_20 = arith.constant dense<0xFF800000> : vector<128xf32>
    %42 = vector.multi_reduction <maximumf>, %41, %cst_20 [1] : vector<128x128xf32> to vector<128xf32>
    %43 = vector.shape_cast %42 : vector<128xf32> to vector<128x1xf32>
    %44 = vector.broadcast %43 : vector<128x1xf32> to vector<128x128xf32>
    %45 = arith.subf %41, %44 : vector<128x128xf32>
    %46 = math.exp %45 : vector<128x128xf32>
    %cst_21 = arith.constant 0.000000e+00 : f32
    %47 = vector.broadcast %cst_21 : f32 to vector<128x128xf32>
    %48 = arith.select %13, %46, %47 : vector<128x128xi1>, vector<128x128xf32>
    %cst_22 = arith.constant dense<0.000000e+00> : vector<128xf32>
    %49 = vector.multi_reduction <add>, %48, %cst_22 [1] : vector<128x128xf32> to vector<128xf32>
    %50 = vector.shape_cast %49 : vector<128xf32> to vector<128x1xf32>
    %51 = math.log %50 : vector<128x1xf32>
    %52 = vector.broadcast %43 : vector<128x1xf32> to vector<128x128xf32>
    %53 = arith.subf %39, %52 : vector<128x128xf32>
    %54 = vector.broadcast %51 : vector<128x1xf32> to vector<128x128xf32>
    %55 = arith.subf %53, %54 : vector<128x128xf32>
    %cst_23 = arith.constant 0.000000e+00 : f32
    %56 = vector.broadcast %cst_23 : f32 to vector<128x128xf32>
    %57 = arith.select %13, %55, %56 : vector<128x128xi1>, vector<128x128xf32>
    %c0_24 = arith.constant 0 : index
    %c0_25 = arith.constant 0 : index
    %58 = vector.load %arg7[%c0_24, %c0_25] : memref<128x128xf32, #tpu.memory_space<vmem>>, vector<128x128xf32>
    tpu.vector_store %arg7[%c0_24, %c0_25], %57 {strides = array<i32>} : memref<128x128xf32, #tpu.memory_space<vmem>>, vector<128x128xf32>,
    return
  }
  func.func @transform_0(%arg0: i32) -> (i32, i32) {
    %c0_i32 = arith.constant 0 : i32
    %c0_i32_0 = arith.constant 0 : i32
    return %arg0, %c0_i32 : i32, i32
  }
  func.func @transform_1(%arg0: i32) -> (i32, i32) {
    %c0_i32 = arith.constant 0 : i32
    %c0_i32_0 = arith.constant 0 : i32
    %c0_i32_1 = arith.constant 0 : i32
    return %c0_i32, %c0_i32_0 : i32, i32
  }
  func.func @transform_2(%arg0: i32) -> (i32, i32) {
    %c0_i32 = arith.constant 0 : i32
    %c0_i32_0 = arith.constant 0 : i32
    %c0_i32_1 = arith.constant 0 : i32
    return %c0_i32, %c0_i32_0 : i32, i32
  }
  func.func @transform_3(%arg0: i32) -> (i32, i32) {
    %c0_i32 = arith.constant 0 : i32
    %c0_i32_0 = arith.constant 0 : i32
    %c0_i32_1 = arith.constant 0 : i32
    return %c0_i32, %c0_i32_0 : i32, i32
  }
  func.func @transform_4(%arg0: i32) -> (i32, i32) {
    %c0_i32 = arith.constant 0 : i32
    %c0_i32_0 = arith.constant 0 : i32
    %c0_i32_1 = arith.constant 0 : i32
    return %c0_i32, %c0_i32_0 : i32, i32
  }
  func.func @transform_5(%arg0: i32) -> (i32, i32) {
    %c0_i32 = arith.constant 0 : i32
    %c0_i32_0 = arith.constant 0 : i32
    %c0_i32_1 = arith.constant 0 : i32
    return %c0_i32, %c0_i32_0 : i32, i32
  }
  func.func @transform_6(%arg0: i32) -> (i32, i32) {
    %c0_i32 = arith.constant 0 : i32
    %c0_i32_0 = arith.constant 0 : i32
    return %arg0, %c0_i32 : i32, i32
  }
}

module attributes {stable_mosaic.version = 11 : i64} {
  func.func @gcn_hidden_layer_kernel(%arg0: i32, %arg1: memref<128x128xbf16, #tpu.memory_space<vmem>>, %arg2: memref<128x128xbf16, #tpu.memory_space<vmem>>, %arg3: memref<128x128xbf16, #tpu.memory_space<vmem>>, %arg4: memref<1x128xf32, #tpu.memory_space<vmem>>, %arg5: memref<128x128xbf16, #tpu.memory_space<vmem>>) attributes {dimension_semantics = [#tpu.dimension_semantics<parallel>], iteration_bounds = array<i64: 1>, scalar_prefetch = 0 : i64, scratch_operands = 0 : i64, tpu.core_type = #tpu.core_type<tc>, window_params = [{transform_indices = @transform_0, window_bounds = array<i64: 128, 128>}, {pipeline_mode = #tpu.pipeline_mode<synchronous>, transform_indices = @transform_1, window_bounds = array<i64: 128, 128>}, {pipeline_mode = #tpu.pipeline_mode<synchronous>, transform_indices = @transform_2, window_bounds = array<i64: 128, 128>}, {pipeline_mode = #tpu.pipeline_mode<synchronous>, transform_indices = @transform_3, window_bounds = array<i64: 1, 128>}, {transform_indices = @transform_4, window_bounds = array<i64: 128, 128>}]} {
    %c0 = arith.constant 0 : index
    %c0_0 = arith.constant 0 : index
    %0 = vector.load %arg1[%c0, %c0_0] : memref<128x128xbf16, #tpu.memory_space<vmem>>, vector<128x128xbf16>
    %c0_1 = arith.constant 0 : index
    %c0_2 = arith.constant 0 : index
    %1 = vector.load %arg2[%c0_1, %c0_2] : memref<128x128xbf16, #tpu.memory_space<vmem>>, vector<128x128xbf16>
    %cst = arith.constant dense<0.000000e+00> : vector<128x128xf32>
    %2 = tpu.matmul %0, %1, %cst {dimension_numbers = #tpu.dot_dimension_numbers<[1], [0], [0], [1], [0, 0, 1, 1], [], []>} : vector<128x128xbf16>, vector<128x128xbf16>, vector<128x128xf32> -> vector<128x128xf32>
    %3 = arith.truncf %2 : vector<128x128xf32> to vector<128x128xbf16>
    %c0_3 = arith.constant 0 : index
    %c0_4 = arith.constant 0 : index
    %4 = vector.load %arg3[%c0_3, %c0_4] : memref<128x128xbf16, #tpu.memory_space<vmem>>, vector<128x128xbf16>
    %cst_5 = arith.constant dense<0.000000e+00> : vector<128x128xf32>
    %5 = tpu.matmul %3, %4, %cst_5 {dimension_numbers = #tpu.dot_dimension_numbers<[1], [0], [0], [1], [0, 0, 1, 1], [], []>} : vector<128x128xbf16>, vector<128x128xbf16>, vector<128x128xf32> -> vector<128x128xf32>
    %c0_6 = arith.constant 0 : index
    %c0_7 = arith.constant 0 : index
    %6 = vector.load %arg4[%c0_6, %c0_7] : memref<1x128xf32, #tpu.memory_space<vmem>>, vector<1x128xf32>
    %7 = vector.broadcast %6 : vector<1x128xf32> to vector<128x128xf32>
    %8 = arith.addf %5, %7 : vector<128x128xf32>
    %cst_8 = arith.constant 0.000000e+00 : f32
    %9 = vector.broadcast %cst_8 : f32 to vector<128x128xf32>
    %10 = arith.maximumf %8, %9 : vector<128x128xf32>
    %11 = arith.truncf %10 : vector<128x128xf32> to vector<128x128xbf16>
    %c0_9 = arith.constant 0 : index
    %c0_10 = arith.constant 0 : index
    %12 = vector.load %arg5[%c0_9, %c0_10] : memref<128x128xbf16, #tpu.memory_space<vmem>>, vector<128x128xbf16>
    tpu.vector_store %arg5[%c0_9, %c0_10], %11 {strides = array<i32>} : memref<128x128xbf16, #tpu.memory_space<vmem>>, vector<128x128xbf16>,
    return
  }
  func.func @transform_0(%arg0: i32) -> (i32, i32) {
    %c0_i32 = arith.constant 0 : i32
    %c0_i32_0 = arith.constant 0 : i32
    return %arg0, %c0_i32 : i32, i32
  }
  func.func @transform_1(%arg0: i32) -> (i32, i32) {
    %c0_i32 = arith.constant 0 : i32
    %c0_i32_0 = arith.constant 0 : i32
    %c0_i32_1 = arith.constant 0 : i32
    return %c0_i32, %c0_i32_0 : i32, i32
  }
  func.func @transform_2(%arg0: i32) -> (i32, i32) {
    %c0_i32 = arith.constant 0 : i32
    %c0_i32_0 = arith.constant 0 : i32
    %c0_i32_1 = arith.constant 0 : i32
    return %c0_i32, %c0_i32_0 : i32, i32
  }
  func.func @transform_3(%arg0: i32) -> (i32, i32) {
    %c0_i32 = arith.constant 0 : i32
    %c0_i32_0 = arith.constant 0 : i32
    %c0_i32_1 = arith.constant 0 : i32
    return %c0_i32, %c0_i32_0 : i32, i32
  }
  func.func @transform_4(%arg0: i32) -> (i32, i32) {
    %c0_i32 = arith.constant 0 : i32
    %c0_i32_0 = arith.constant 0 : i32
    return %arg0, %c0_i32 : i32, i32
  }
}

</mosaic_0001>

<bundles_post_ra>
// kernel: mul.13
= control target key start
LH: loop header
LB: loop body
LE: loop exit
PB: predicated region body
PF: predicated region fallthrough
CT: control target
= control target key end

     0   :  { %s34_s0 = inlined_call_operand.vmem [shape: f32[56], index: 0, kind: input, shape index: {}]   ;;  %s35_s1 = inlined_call_operand.vmem [shape: f32[56], index: 1, kind: input, shape index: {}]   ;;  %s36_s2 = inlined_call_operand.vmem [shape: f32[56], index: 2, kind: output, shape index: {}]  }
   0x1   :  { %v3_v0 = vld [vmem:[%s34_s0] sm:$0x1] }
   0x2   :  { %v4_v1 = vld [vmem:[%s35_s1] sm:$0x1] }
   0x3   :  { %v7_v2 = vmul.f32 %v4_v1, %v3_v0 }
   0x5   :  { %9 = vst [vmem:[%s36_s2] sm:$0x1] %v7_v2 }

// kernel: gcn_forward.3
= control target key start
LH: loop header
LB: loop body
LE: loop exit
PB: predicated region body
PF: predicated region fallthrough
CT: control target
= control target key end

     0   :  { %s618_s1 = inlined_call_operand.vmem [shape: bf16[128,128], index: 1, kind: input, shape index: {}]   ;;  %s619_s0 = inlined_call_operand.vmem [shape: bf16[128,128], index: 0, kind: input, shape index: {}]   ;;  %s620_s2 = inlined_call_operand.vmem [shape: f32[1,128], index: 2, kind: input, shape index: {}]   ;;  %s621_s3 = inlined_call_operand.vmem [shape: bf16[128,128], index: 3, kind: output, shape index: {}]  }
   0x1   :  { %v507_v0 = vld [vmem:[%s618_s1 + $0x38] sm:$0xff]   ;;  %v508_v1 = vld [vmem:[%s618_s1 + $0x30] sm:$0xff]   ;;  %v509_v2 = vld [vmem:[%s618_s1 + $0x28] sm:$0xff]  }
   0x2   :  { %459 = vmatprep.subr.bf16.mxu0 %v507_v0  ;;  %491 = vmatprep.subr.bf16.mxu1 %v507_v0  ;;  %v510_v3 = vld [vmem:[%s618_s1 + $0x20] sm:$0xff]   ;;  %v511_v6 = vld [vmem:[%s618_s1 + $0x18] sm:$0xff]   ;;  %v512_v7 = vld [vmem:[%s618_s1 + $0x10] sm:$0xff]  }
   0x3   :  { %460 = vmatpush3.bf16.msra.mxu0 %v507_v0  ;;  %499 = vmatpush3.bf16.msra.mxu1 %v507_v0  ;;  %v515_v4 = vld [vmem:[%s619_s0] sm:$0xff]   ;;  %v513_v8 = vld [vmem:[%s618_s1 + $0x8] sm:$0xff]   ;;  %v519_v12 = vld [vmem:[%s619_s0 + $0x10] sm:$0xff]  }
   0x4   :  { %461 = vmatprep.subr.bf16.mxu0 %v508_v1  ;;  %492 = vmatprep.subr.bf16.mxu1 %v508_v1  ;;  %v516_v5 = vld [vmem:[%s619_s0 + $0x20] sm:$0xff]   ;;  %v517_v10 = vld [vmem:[%s619_s0 + $0x8] sm:$0xff]   ;;  %v520_v13 = vld [vmem:[%s619_s0 + $0x30] sm:$0xff]  }
   0x5   :  { %475 = vmatprep.mubr.bf16.mxu0 %v515_v4  ;;  %483 = vmatprep.mubr.bf16.mxu1 %v516_v5  ;;  %v514_v9 = vld [vmem:[%s618_s1] sm:$0xff]   ;;  %v518_v11 = vld [vmem:[%s619_s0 + $0x28] sm:$0xff]   ;;  %v521_v14 = vld [vmem:[%s619_s0 + $0x18] sm:$0xff]  }
   0x6   :  { %v522_v15 = vld [vmem:[%s619_s0 + $0x38] sm:$0xff]   ;;  %v347_v16 = vld [vmem:[%s620_s2] ss:$0 sm:$0xff] }
   0x7   :  { %462 = vmatpush3.bf16.msra.mxu0 %v508_v1  ;;  %500 = vmatpush3.bf16.msra.mxu1 %v508_v1 }
   0x8   :  { %463 = vmatprep.subr.bf16.mxu0 %v509_v2  ;;  %493 = vmatprep.subr.bf16.mxu1 %v509_v2 }
   0xb   :  { %464 = vmatpush3.bf16.msra.mxu0 %v509_v2  ;;  %501 = vmatpush3.bf16.msra.mxu1 %v509_v2 }
   0xc   :  { %465 = vmatprep.subr.bf16.mxu0 %v510_v3  ;;  %494 = vmatprep.subr.bf16.mxu1 %v510_v3 }
   0xf   :  { %466 = vmatpush3.bf16.msra.mxu0 %v510_v3  ;;  %502 = vmatpush3.bf16.msra.mxu1 %v510_v3 }
  0x10   :  { %467 = vmatprep.subr.bf16.mxu0 %v511_v6  ;;  %495 = vmatprep.subr.bf16.mxu1 %v511_v6 }
  0x13   :  { %468 = vmatpush3.bf16.msra.mxu0 %v511_v6  ;;  %503 = vmatpush3.bf16.msra.mxu1 %v511_v6 }
  0x14   :  { %469 = vmatprep.subr.bf16.mxu0 %v512_v7  ;;  %496 = vmatprep.subr.bf16.mxu1 %v512_v7 }
  0x17   :  { %470 = vmatpush3.bf16.msra.mxu0 %v512_v7  ;;  %504 = vmatpush3.bf16.msra.mxu1 %v512_v7 }
  0x18   :  { %471 = vmatprep.subr.bf16.mxu0 %v513_v8  ;;  %497 = vmatprep.subr.bf16.mxu1 %v513_v8 }
  0x1b   :  { %472 = vmatpush3.bf16.msra.mxu0 %v513_v8  ;;  %505 = vmatpush3.bf16.msra.mxu1 %v513_v8 }
  0x1c   :  { %473 = vmatprep.subr.bf16.mxu0 %v514_v9  ;;  %498 = vmatprep.subr.bf16.mxu1 %v514_v9 }
  0x1f   :  { %474 = vmatpush3.bf16.msra.mxu0 %v514_v9  ;;  %506 = vmatpush3.bf16.msra.mxu1 %v514_v9 }
  0x22   :  { %476 = vmatmul.mubr.bf16.vlgmr.msra.gmra.mxu0 %v517_v10  ;;  %484 = vmatmul.mubr.bf16.vlgmr.msra.gmra.mxu1 %v518_v11 }
  0x23   :  { %479 = vmatprep.mubr.bf16.mxu0 %v519_v12  ;;  %487 = vmatprep.mubr.bf16.mxu1 %v520_v13 }
  0x2a   :  { %480 = vmatmul.mubr.bf16.gmra.mxu0 %v521_v14  ;;  %488 = vmatmul.mubr.bf16.gmra.mxu1 %v522_v15 }
  0xe2   :  { %v477_v17 = vpop.f32.mrf.mxu0  ;;  %v485_v18 = vpop.f32.mrf.mxu1 }
  0xe3   :  { %v193_v19 = vadd.f32 %v477_v17, %v347_v16  ;;  %v225_v20 = vadd.f32 %v485_v18, %v347_v16 }
  0xe4   :  { %v184_v21 = vpop.f32.mrf.mxu0  ;;  %v216_v22 = vpop.f32.mrf.mxu1 }
  0xe5   :  { %v185_v23 = vadd.f32 %v347_v16, %v184_v21  ;;  %v217_v24 = vadd.f32 %v347_v16, %v216_v22  ;;  %v249_v29 = vmax.f32 %v193_v19, 0.0  ;;  %v257_v30 = vmax.f32 %v225_v20, 0.0 }
  0xe6   :  { %v478_v25 = vpop.f32.mrf.mxu0  ;;  %v486_v26 = vpop.f32.mrf.mxu1 }
  0xe7   :  { %v196_v27 = vadd.f32 %v478_v25, %v347_v16  ;;  %v228_v28 = vadd.f32 %v486_v26, %v347_v16  ;;  %v247_v37 = vmax.f32 %v185_v23, 0.0  ;;  %v255_v38 = vmax.f32 %v217_v24, 0.0 }
  0xe8   :  { %v187_v31 = vpop.f32.mrf.mxu0  ;;  %v219_v32 = vpop.f32.mrf.mxu1 }
  0xe9   :  { %v250_v33 = vmax.f32 %v196_v27, 0.0  ;;  %v258_v34 = vmax.f32 %v228_v28, 0.0  ;;  %v188_v35 = vadd.f32 %v347_v16, %v187_v31  ;;  %v220_v36 = vadd.f32 %v347_v16, %v219_v32 }
  0xea   :  { %v481_v39 = vpop.f32.mrf.mxu0  ;;  %v489_v40 = vpop.f32.mrf.mxu1 }
  0xeb   :  { %v404_v41 = vpack.c.bf16 %v250_v33, %v249_v29  ;;  %v424_v42 = vpack.c.bf16 %v258_v34, %v257_v30  ;;  %v248_v43 = vmax.f32 %v188_v35, 0.0  ;;  %v256_v44 = vmax.f32 %v220_v36, 0.0 }
  0xec   :  { %v209_v45 = vadd.f32 %v481_v39, %v347_v16  ;;  %v241_v46 = vadd.f32 %v489_v40, %v347_v16  ;;  %v200_v47 = vpop.f32.mrf.mxu0  ;;  %v232_v48 = vpop.f32.mrf.mxu1 }
  0xed   :  { %436 = vst [vmem:[%s621_s3 + $0x8] sm:$0xff] %v404_v41   ;;  %440 = vst [vmem:[%s621_s3 + $0x28] sm:$0xff] %v424_v42   ;;  %v399_v49 = vpack.c.bf16 %v248_v43, %v247_v37  ;;  %v419_v50 = vpack.c.bf16 %v256_v44, %v255_v38  ;;  %v201_v51 = vadd.f32 %v347_v16, %v200_v47 }
  0xee   :  { %v233_v52 = vadd.f32 %v347_v16, %v232_v48  ;;  %v482_v53 = vpop.f32.mrf.mxu0  ;;  %v490_v54 = vpop.f32.mrf.mxu1  ;;  %v253_v57 = vmax.f32 %v209_v45, 0.0  ;;  %v261_v58 = vmax.f32 %v241_v46, 0.0 }
  0xef   :  { %400 = vst [vmem:[%s621_s3] sm:$0xff] %v399_v49   ;;  %439 = vst [vmem:[%s621_s3 + $0x20] sm:$0xff] %v419_v50   ;;  %v212_v55 = vadd.f32 %v482_v53, %v347_v16  ;;  %v244_v56 = vadd.f32 %v490_v54, %v347_v16  ;;  %v251_v1 = vmax.f32 %v201_v51, 0.0 }
  0xf0   :  { %v203_v59 = vpop.f32.mrf.mxu0  ;;  %v235_v60 = vpop.f32.mrf.mxu1  ;;  %v259_v2 = vmax.f32 %v233_v52, 0.0 }
  0xf1   :  { %v254_v61 = vmax.f32 %v212_v55, 0.0  ;;  %v262_v62 = vmax.f32 %v244_v56, 0.0  ;;  %v204_v63 = vadd.f32 %v347_v16, %v203_v59  ;;  %v236_v0 = vadd.f32 %v347_v16, %v235_v60 }
  0xf3   :  { %v414_v3 = vpack.c.bf16 %v254_v61, %v253_v57  ;;  %v434_v4 = vpack.c.bf16 %v262_v62, %v261_v58  ;;  %v252_v5 = vmax.f32 %v204_v63, 0.0  ;;  %v260_v6 = vmax.f32 %v236_v0, 0.0 }
  0xf5   :  { %438 = vst [vmem:[%s621_s3 + $0x18] sm:$0xff] %v414_v3   ;;  %442 = vst [vmem:[%s621_s3 + $0x38] sm:$0xff] %v434_v4   ;;  %v409_v7 = vpack.c.bf16 %v252_v5, %v251_v1  ;;  %v429_v8 = vpack.c.bf16 %v260_v6, %v259_v2 }
  0xf7   :  { %437 = vst [vmem:[%s621_s3 + $0x10] sm:$0xff] %v409_v7   ;;  %441 = vst [vmem:[%s621_s3 + $0x30] sm:$0xff] %v429_v8  }

// kernel: gcn_forward.4
= control target key start
LH: loop header
LB: loop body
LE: loop exit
PB: predicated region body
PF: predicated region fallthrough
CT: control target
= control target key end

     0   :  { %s867_s1 = inlined_call_operand.vmem [shape: bf16[128,128], index: 1, kind: input, shape index: {}]   ;;  %s868_s0 = inlined_call_operand.vmem [shape: bf16[128,128], index: 0, kind: input, shape index: {}]   ;;  %s869_s2 = inlined_call_operand.vmem [shape: bf16[128,128], index: 2, kind: input, shape index: {}]   ;;  %s870_s3 = inlined_call_operand.vmem [shape: f32[1,128], index: 3, kind: input, shape index: {}]   ;;  %s871_s4 = inlined_call_operand.vmem [shape: bf16[128,128], index: 4, kind: output, shape index: {}]  }
   0x1   :  { %v719_v0 = vld [vmem:[%s867_s1 + $0x38] sm:$0xff]   ;;  %v720_v1 = vld [vmem:[%s867_s1 + $0x30] sm:$0xff]   ;;  %v721_v2 = vld [vmem:[%s867_s1 + $0x28] sm:$0xff]  }
   0x2   :  { %655 = vmatprep.subr.bf16.mxu0 %v719_v0  ;;  %v722_v3 = vld [vmem:[%s867_s1 + $0x20] sm:$0xff]   ;;  %v723_v5 = vld [vmem:[%s867_s1 + $0x18] sm:$0xff]   ;;  %v724_v6 = vld [vmem:[%s867_s1 + $0x10] sm:$0xff]  }
   0x3   :  { %656 = vmatpush3.bf16.msra.mxu0 %v719_v0  ;;  %v727_v4 = vld [vmem:[%s868_s0] sm:$0xff]   ;;  %v735_v7 = vld [vmem:[%s869_s2 + $0x38] sm:$0xff]   ;;  %v736_v8 = vld [vmem:[%s869_s2 + $0x30] sm:$0xff]  }
   0x4   :  { %657 = vmatprep.subr.bf16.mxu0 %v720_v1  ;;  %671 = vmatprep.mubr.bf16.mxu0 %v727_v4  ;;  %v725_v9 = vld [vmem:[%s867_s1 + $0x8] sm:$0xff]   ;;  %v726_v11 = vld [vmem:[%s867_s1] sm:$0xff]   ;;  %v739_v13 = vld [vmem:[%s869_s2 + $0x18] sm:$0xff]  }
   0x5   :  { %687 = vmatprep.subr.bf16.mxu1 %v735_v7  ;;  %v737_v10 = vld [vmem:[%s869_s2 + $0x28] sm:$0xff]   ;;  %v738_v12 = vld [vmem:[%s869_s2 + $0x20] sm:$0xff]   ;;  %v729_v15 = vld [vmem:[%s868_s0 + $0x10] sm:$0xff]  }
   0x6   :  { %688 = vmatpush3.bf16.msra.mxu1 %v735_v7  ;;  %v728_v14 = vld [vmem:[%s868_s0 + $0x8] sm:$0xff]   ;;  %v740_v16 = vld [vmem:[%s869_s2 + $0x10] sm:$0xff]   ;;  %v730_v17 = vld [vmem:[%s868_s0 + $0x18] sm:$0xff]  }
   0x7   :  { %658 = vmatpush3.bf16.msra.mxu0 %v720_v1  ;;  %689 = vmatprep.subr.bf16.mxu1 %v736_v8  ;;  %v731_v18 = vld [vmem:[%s868_s0 + $0x20] sm:$0xff]   ;;  %v732_v19 = vld [vmem:[%s868_s0 + $0x28] sm:$0xff]   ;;  %v733_v20 = vld [vmem:[%s868_s0 + $0x30] sm:$0xff]  }
   0x8   :  { %659 = vmatprep.subr.bf16.mxu0 %v721_v2  ;;  %v734_v21 = vld [vmem:[%s868_s0 + $0x38] sm:$0xff]   ;;  %v741_v22 = vld [vmem:[%s869_s2 + $0x8] sm:$0xff]   ;;  %v742_v23 = vld [vmem:[%s869_s2] sm:$0xff]  }
   0x9   :  { %v535_v49 = vld [vmem:[%s870_s3] ss:$0 sm:$0xff] }
   0xa   :  { %690 = vmatpush3.bf16.msra.mxu1 %v736_v8 }
   0xb   :  { %660 = vmatpush3.bf16.msra.mxu0 %v721_v2  ;;  %691 = vmatprep.subr.bf16.mxu1 %v737_v10 }
   0xc   :  { %661 = vmatprep.subr.bf16.mxu0 %v722_v3 }
   0xe   :  { %692 = vmatpush3.bf16.msra.mxu1 %v737_v10 }
   0xf   :  { %662 = vmatpush3.bf16.msra.mxu0 %v722_v3  ;;  %693 = vmatprep.subr.bf16.mxu1 %v738_v12 }
  0x10   :  { %663 = vmatprep.subr.bf16.mxu0 %v723_v5 }
  0x12   :  { %694 = vmatpush3.bf16.msra.mxu1 %v738_v12 }
  0x13   :  { %664 = vmatpush3.bf16.msra.mxu0 %v723_v5  ;;  %695 = vmatprep.subr.bf16.mxu1 %v739_v13 }
  0x14   :  { %665 = vmatprep.subr.bf16.mxu0 %v724_v6 }
  0x16   :  { %696 = vmatpush3.bf16.msra.mxu1 %v739_v13 }
  0x17   :  { %666 = vmatpush3.bf16.msra.mxu0 %v724_v6  ;;  %697 = vmatprep.subr.bf16.mxu1 %v740_v16 }
  0x18   :  { %667 = vmatprep.subr.bf16.mxu0 %v725_v9 }
  0x1a   :  { %698 = vmatpush3.bf16.msra.mxu1 %v740_v16 }
  0x1b   :  { %668 = vmatpush3.bf16.msra.mxu0 %v725_v9  ;;  %699 = vmatprep.subr.bf16.mxu1 %v741_v22 }
  0x1c   :  { %669 = vmatprep.subr.bf16.mxu0 %v726_v11 }
  0x1e   :  { %700 = vmatpush3.bf16.msra.mxu1 %v741_v22 }
  0x1f   :  { %670 = vmatpush3.bf16.msra.mxu0 %v726_v11  ;;  %701 = vmatprep.subr.bf16.mxu1 %v742_v23 }
  0x22   :  { %672 = vmatmul.mubr.bf16.vlgmr.msra.gmra.mxu0 %v728_v14  ;;  %702 = vmatpush3.bf16.msra.mxu1 %v742_v23 }
  0x23   :  { %675 = vmatprep.mubr.bf16.mxu0 %v729_v15 }
  0x2a   :  { %676 = vmatmul.mubr.bf16.gmra.mxu0 %v730_v17 }
  0x2b   :  { %679 = vmatprep.mubr.bf16.mxu0 %v731_v18 }
  0x32   :  { %680 = vmatmul.mubr.bf16.gmra.mxu0 %v732_v19 }
  0x33   :  { %683 = vmatprep.mubr.bf16.mxu0 %v733_v20 }
  0x3a   :  { %684 = vmatmul.mubr.bf16.gmra.mxu0 %v734_v21 }
  0xe2   :  { %v673_v24 = vpop.f32.mrf.mxu0 }
  0xe4   :  { %v180_v25 = vpop.f32.mrf.mxu0 }
  0xe6   :  { %v674_v26 = vpop.f32.mrf.mxu0 }
  0xe7   :  { %v244_v29 = vpack.c.bf16 %v674_v26, %v673_v24 }
  0xe8   :  { %v183_v27 = vpop.f32.mrf.mxu0 }
  0xe9   :  { %v243_v28 = vpack.c.bf16 %v183_v27, %v180_v25 }
  0xea   :  { %v677_v30 = vpop.f32.mrf.mxu0 }
  0xeb   :  { %703 = vmatprep.mubr.bf16.mxu1 %v243_v28 }
  0xec   :  { %v196_v31 = vpop.f32.mrf.mxu0  ;;  %704 = vmatmul.mubr.bf16.vlgmr.msra.gmra.mxu1 %v244_v29 }
  0xee   :  { %v678_v32 = vpop.f32.mrf.mxu0 }
  0xef   :  { %v246_v35 = vpack.c.bf16 %v678_v32, %v677_v30 }
  0xf0   :  { %v199_v33 = vpop.f32.mrf.mxu0 }
  0xf1   :  { %v245_v34 = vpack.c.bf16 %v199_v33, %v196_v31 }
  0xf2   :  { %v681_v36 = vpop.f32.mrf.mxu0 }
  0xf3   :  { %707 = vmatprep.mubr.bf16.mxu1 %v245_v34 }
  0xf4   :  { %v212_v37 = vpop.f32.mrf.mxu0  ;;  %708 = vmatmul.mubr.bf16.gmra.mxu1 %v246_v35 }
  0xf6   :  { %v682_v38 = vpop.f32.mrf.mxu0 }
  0xf7   :  { %v248_v41 = vpack.c.bf16 %v682_v38, %v681_v36 }
  0xf8   :  { %v215_v39 = vpop.f32.mrf.mxu0 }
  0xf9   :  { %v247_v40 = vpack.c.bf16 %v215_v39, %v212_v37 }
  0xfa   :  { %v685_v42 = vpop.f32.mrf.mxu0 }
  0xfb   :  { %711 = vmatprep.mubr.bf16.mxu1 %v247_v40 }
  0xfc   :  { %v228_v43 = vpop.f32.mrf.mxu0  ;;  %712 = vmatmul.mubr.bf16.gmra.mxu1 %v248_v41 }
  0xfe   :  { %v686_v44 = vpop.f32.mrf.mxu0 }
  0xff   :  { %v250_v47 = vpack.c.bf16 %v686_v44, %v685_v42 }
 0x100   :  { %v231_v45 = vpop.f32.mrf.mxu0 }
 0x101   :  { %v249_v46 = vpack.c.bf16 %v231_v45, %v228_v43 }
 0x103   :  { %715 = vmatprep.mubr.bf16.mxu1 %v249_v46 }
 0x104   :  { %716 = vmatmul.mubr.bf16.gmra.mxu1 %v250_v47 }
 0x1ac   :  { %v705_v48 = vpop.f32.mrf.mxu1 }
 0x1ad   :  { %v365_v51 = vadd.f32 %v705_v48, %v535_v49 }
 0x1ae   :  { %v356_v50 = vpop.f32.mrf.mxu1 }
 0x1af   :  { %v357_v53 = vadd.f32 %v535_v49, %v356_v50  ;;  %v421_v56 = vmax.f32 %v365_v51, 0.0 }
 0x1b0   :  { %v706_v52 = vpop.f32.mrf.mxu1 }
 0x1b1   :  { %v368_v54 = vadd.f32 %v706_v52, %v535_v49  ;;  %v419_v60 = vmax.f32 %v357_v53, 0.0 }
 0x1b2   :  { %v359_v55 = vpop.f32.mrf.mxu1 }
 0x1b3   :  { %v422_v57 = vmax.f32 %v368_v54, 0.0  ;;  %v360_v58 = vadd.f32 %v535_v49, %v359_v55 }
 0x1b4   :  { %v709_v59 = vpop.f32.mrf.mxu1 }
 0x1b5   :  { %v584_v61 = vpack.c.bf16 %v422_v57, %v421_v56  ;;  %v420_v62 = vmax.f32 %v360_v58, 0.0  ;;  %v381_v1 = vadd.f32 %v709_v59, %v535_v49 }
 0x1b6   :  { %v372_v63 = vpop.f32.mrf.mxu1 }
 0x1b7   :  { %616 = vst [vmem:[%s871_s4 + $0x8] sm:$0xff] %v584_v61   ;;  %v579_v0 = vpack.c.bf16 %v420_v62, %v419_v60  ;;  %v373_v3 = vadd.f32 %v535_v49, %v372_v63  ;;  %v425_v6 = vmax.f32 %v381_v1, 0.0 }
 0x1b8   :  { %v710_v2 = vpop.f32.mrf.mxu1 }
 0x1b9   :  { %580 = vst [vmem:[%s871_s4] sm:$0xff] %v579_v0   ;;  %v384_v4 = vadd.f32 %v710_v2, %v535_v49  ;;  %v423_v10 = vmax.f32 %v373_v3, 0.0 }
 0x1ba   :  { %v375_v5 = vpop.f32.mrf.mxu1 }
 0x1bb   :  { %v426_v7 = vmax.f32 %v384_v4, 0.0  ;;  %v376_v8 = vadd.f32 %v535_v49, %v375_v5 }
 0x1bc   :  { %v713_v9 = vpop.f32.mrf.mxu1 }
 0x1bd   :  { %v594_v11 = vpack.c.bf16 %v426_v7, %v425_v6  ;;  %v424_v12 = vmax.f32 %v376_v8, 0.0  ;;  %v397_v15 = vadd.f32 %v713_v9, %v535_v49 }
 0x1be   :  { %v388_v13 = vpop.f32.mrf.mxu1 }
 0x1bf   :  { %618 = vst [vmem:[%s871_s4 + $0x18] sm:$0xff] %v594_v11   ;;  %v589_v14 = vpack.c.bf16 %v424_v12, %v423_v10  ;;  %v389_v17 = vadd.f32 %v535_v49, %v388_v13  ;;  %v429_v20 = vmax.f32 %v397_v15, 0.0 }
 0x1c0   :  { %v714_v16 = vpop.f32.mrf.mxu1 }
 0x1c1   :  { %617 = vst [vmem:[%s871_s4 + $0x10] sm:$0xff] %v589_v14   ;;  %v400_v18 = vadd.f32 %v714_v16, %v535_v49  ;;  %v427_v24 = vmax.f32 %v389_v17, 0.0 }
 0x1c2   :  { %v391_v19 = vpop.f32.mrf.mxu1 }
 0x1c3   :  { %v430_v21 = vmax.f32 %v400_v18, 0.0  ;;  %v392_v22 = vadd.f32 %v535_v49, %v391_v19 }
 0x1c4   :  { %v717_v23 = vpop.f32.mrf.mxu1 }
 0x1c5   :  { %v604_v25 = vpack.c.bf16 %v430_v21, %v429_v20  ;;  %v428_v26 = vmax.f32 %v392_v22, 0.0  ;;  %v413_v29 = vadd.f32 %v717_v23, %v535_v49 }
 0x1c6   :  { %v404_v27 = vpop.f32.mrf.mxu1 }
 0x1c7   :  { %620 = vst [vmem:[%s871_s4 + $0x28] sm:$0xff] %v604_v25   ;;  %v599_v28 = vpack.c.bf16 %v428_v26, %v427_v24  ;;  %v405_v31 = vadd.f32 %v535_v49, %v404_v27  ;;  %v433_v34 = vmax.f32 %v413_v29, 0.0 }
 0x1c8   :  { %v718_v30 = vpop.f32.mrf.mxu1 }
 0x1c9   :  { %619 = vst [vmem:[%s871_s4 + $0x20] sm:$0xff] %v599_v28   ;;  %v416_v32 = vadd.f32 %v718_v30, %v535_v49  ;;  %v431_v37 = vmax.f32 %v405_v31, 0.0 }
 0x1ca   :  { %v407_v33 = vpop.f32.mrf.mxu1 }
 0x1cb   :  { %v434_v35 = vmax.f32 %v416_v32, 0.0  ;;  %v408_v36 = vadd.f32 %v535_v49, %v407_v33 }
 0x1cd   :  { %v614_v38 = vpack.c.bf16 %v434_v35, %v433_v34  ;;  %v432_v39 = vmax.f32 %v408_v36, 0.0 }
 0x1cf   :  { %622 = vst [vmem:[%s871_s4 + $0x38] sm:$0xff] %v614_v38   ;;  %v609_v40 = vpack.c.bf16 %v432_v39, %v431_v37 }
 0x1d1   :  { %621 = vst [vmem:[%s871_s4 + $0x30] sm:$0xff] %v609_v40  }

// kernel: gcn_forward.5
= control target key start
LH: loop header
LB: loop body
LE: loop exit
PB: predicated region body
PF: predicated region fallthrough
CT: control target
= control target key end

     0   :  { %v427_v48 = vlaneseq  ;;  %s1853_s1 = inlined_call_operand.vmem [shape: bf16[128,128], index: 1, kind: input, shape index: {}]   ;;  %s1854_s0 = inlined_call_operand.vmem [shape: bf16[128,128], index: 0, kind: input, shape index: {}]   ;;  %s1855_s2 = inlined_call_operand.vmem [shape: bf16[128,128], index: 2, kind: input, shape index: {}]   ;;  %s1856_s3 = inlined_call_operand.vmem [shape: f32[1,128], index: 3, kind: input, shape index: {}]   ;;  %s1857_s4 = inlined_call_operand.vmem [shape: f32[1,128], index: 4, kind: input, shape index: {}]   ;;  %s1858_s5 = inlined_call_operand.vmem [shape: f32[1,128], index: 5, kind: input, shape index: {}]   ;;  %s1859_s6 = inlined_call_operand.vmem [shape: f32[128,128], index: 6, kind: output, shape index: {}]  }
   0x1   :  { %v1050_v0 = vld [vmem:[%s1853_s1 + $0x38] sm:$0xff]   ;;  %v1051_v1 = vld [vmem:[%s1853_s1 + $0x30] sm:$0xff]   ;;  %v1052_v2 = vld [vmem:[%s1853_s1 + $0x28] sm:$0xff]  }
   0x2   :  { %986 = vmatprep.subr.bf16.mxu0 %v1050_v0  ;;  %v1053_v3 = vld [vmem:[%s1853_s1 + $0x20] sm:$0xff]   ;;  %v1054_v5 = vld [vmem:[%s1853_s1 + $0x18] sm:$0xff]   ;;  %v1055_v6 = vld [vmem:[%s1853_s1 + $0x10] sm:$0xff]   ;;  %v1277_v49 = vand.u32 127, %v427_v48 }
   0x3   :  { %987 = vmatpush3.bf16.msra.mxu0 %v1050_v0  ;;  %v1058_v4 = vld [vmem:[%s1854_s0] sm:$0xff]   ;;  %v1066_v7 = vld [vmem:[%s1855_s2 + $0x38] sm:$0xff]   ;;  %v1067_v8 = vld [vmem:[%s1855_s2 + $0x30] sm:$0xff]  }
   0x4   :  { %988 = vmatprep.subr.bf16.mxu0 %v1051_v1  ;;  %1002 = vmatprep.mubr.bf16.mxu0 %v1058_v4  ;;  %v1056_v9 = vld [vmem:[%s1853_s1 + $0x8] sm:$0xff]   ;;  %v1057_v11 = vld [vmem:[%s1853_s1] sm:$0xff]   ;;  %v1070_v13 = vld [vmem:[%s1855_s2 + $0x18] sm:$0xff]   ;;  %vm429_vm0 = vcmp.lt.s32.totalorder %v1277_v49, 8 }
   0x5   :  { %1018 = vmatprep.subr.bf16.mxu1 %v1066_v7  ;;  %v1068_v10 = vld [vmem:[%s1855_s2 + $0x28] sm:$0xff]   ;;  %v1069_v12 = vld [vmem:[%s1855_s2 + $0x20] sm:$0xff]   ;;  %v1060_v15 = vld [vmem:[%s1854_s0 + $0x10] sm:$0xff]  }
   0x6   :  { %1019 = vmatpush3.bf16.msra.mxu1 %v1066_v7  ;;  %v1059_v14 = vld [vmem:[%s1854_s0 + $0x8] sm:$0xff]   ;;  %v1071_v16 = vld [vmem:[%s1855_s2 + $0x10] sm:$0xff]   ;;  %v1061_v17 = vld [vmem:[%s1854_s0 + $0x18] sm:$0xff]  }
   0x7   :  { %989 = vmatpush3.bf16.msra.mxu0 %v1051_v1  ;;  %1020 = vmatprep.subr.bf16.mxu1 %v1067_v8  ;;  %v1062_v18 = vld [vmem:[%s1854_s0 + $0x20] sm:$0xff]   ;;  %v1063_v19 = vld [vmem:[%s1854_s0 + $0x28] sm:$0xff]   ;;  %v1064_v20 = vld [vmem:[%s1854_s0 + $0x30] sm:$0xff]  }
   0x8   :  { %990 = vmatprep.subr.bf16.mxu0 %v1052_v2  ;;  %v1065_v21 = vld [vmem:[%s1854_s0 + $0x38] sm:$0xff]   ;;  %v1072_v22 = vld [vmem:[%s1855_s2 + $0x8] sm:$0xff]   ;;  %v1073_v23 = vld [vmem:[%s1855_s2] sm:$0xff]  }
   0x9   :  { %v943_v50 = vld [vmem:[%s1856_s3] ss:$0 sm:$0xff] }
   0xa   :  { %1021 = vmatpush3.bf16.msra.mxu1 %v1067_v8 }
   0xb   :  { %991 = vmatpush3.bf16.msra.mxu0 %v1052_v2  ;;  %1022 = vmatprep.subr.bf16.mxu1 %v1068_v10 }
   0xc   :  { %992 = vmatprep.subr.bf16.mxu0 %v1053_v3 }
   0xe   :  { %1023 = vmatpush3.bf16.msra.mxu1 %v1068_v10 }
   0xf   :  { %993 = vmatpush3.bf16.msra.mxu0 %v1053_v3  ;;  %1024 = vmatprep.subr.bf16.mxu1 %v1069_v12 }
  0x10   :  { %994 = vmatprep.subr.bf16.mxu0 %v1054_v5 }
  0x12   :  { %1025 = vmatpush3.bf16.msra.mxu1 %v1069_v12 }
  0x13   :  { %995 = vmatpush3.bf16.msra.mxu0 %v1054_v5  ;;  %1026 = vmatprep.subr.bf16.mxu1 %v1070_v13 }
  0x14   :  { %996 = vmatprep.subr.bf16.mxu0 %v1055_v6 }
  0x16   :  { %1027 = vmatpush3.bf16.msra.mxu1 %v1070_v13 }
  0x17   :  { %997 = vmatpush3.bf16.msra.mxu0 %v1055_v6  ;;  %1028 = vmatprep.subr.bf16.mxu1 %v1071_v16 }
  0x18   :  { %998 = vmatprep.subr.bf16.mxu0 %v1056_v9 }
  0x1a   :  { %1029 = vmatpush3.bf16.msra.mxu1 %v1071_v16 }
  0x1b   :  { %999 = vmatpush3.bf16.msra.mxu0 %v1056_v9  ;;  %1030 = vmatprep.subr.bf16.mxu1 %v1072_v22 }
  0x1c   :  { %1000 = vmatprep.subr.bf16.mxu0 %v1057_v11 }
  0x1e   :  { %1031 = vmatpush3.bf16.msra.mxu1 %v1072_v22 }
  0x1f   :  { %1001 = vmatpush3.bf16.msra.mxu0 %v1057_v11  ;;  %1032 = vmatprep.subr.bf16.mxu1 %v1073_v23 }
  0x22   :  { %1003 = vmatmul.mubr.bf16.vlgmr.msra.gmra.mxu0 %v1059_v14  ;;  %1033 = vmatpush3.bf16.msra.mxu1 %v1073_v23 }
  0x23   :  { %1006 = vmatprep.mubr.bf16.mxu0 %v1060_v15 }
  0x2a   :  { %1007 = vmatmul.mubr.bf16.gmra.mxu0 %v1061_v17 }
  0x2b   :  { %1010 = vmatprep.mubr.bf16.mxu0 %v1062_v18 }
  0x32   :  { %1011 = vmatmul.mubr.bf16.gmra.mxu0 %v1063_v19 }
  0x33   :  { %1014 = vmatprep.mubr.bf16.mxu0 %v1064_v20 }
  0x3a   :  { %1015 = vmatmul.mubr.bf16.gmra.mxu0 %v1065_v21 }
  0xe2   :  { %v1004_v24 = vpop.f32.mrf.mxu0 }
  0xe4   :  { %v186_v25 = vpop.f32.mrf.mxu0 }
  0xe6   :  { %v1005_v26 = vpop.f32.mrf.mxu0 }
  0xe7   :  { %v250_v29 = vpack.c.bf16 %v1005_v26, %v1004_v24 }
  0xe8   :  { %v189_v27 = vpop.f32.mrf.mxu0 }
  0xe9   :  { %v249_v28 = vpack.c.bf16 %v189_v27, %v186_v25 }
  0xea   :  { %v1008_v30 = vpop.f32.mrf.mxu0 }
  0xeb   :  { %1034 = vmatprep.mubr.bf16.mxu1 %v249_v28 }
  0xec   :  { %v202_v31 = vpop.f32.mrf.mxu0  ;;  %1035 = vmatmul.mubr.bf16.vlgmr.msra.gmra.mxu1 %v250_v29 }
  0xee   :  { %v1009_v32 = vpop.f32.mrf.mxu0 }
  0xef   :  { %v252_v35 = vpack.c.bf16 %v1009_v32, %v1008_v30 }
  0xf0   :  { %v205_v33 = vpop.f32.mrf.mxu0 }
  0xf1   :  { %v251_v34 = vpack.c.bf16 %v205_v33, %v202_v31 }
  0xf2   :  { %v1012_v36 = vpop.f32.mrf.mxu0 }
  0xf3   :  { %1038 = vmatprep.mubr.bf16.mxu1 %v251_v34 }
  0xf4   :  { %v218_v37 = vpop.f32.mrf.mxu0  ;;  %1039 = vmatmul.mubr.bf16.gmra.mxu1 %v252_v35 }
  0xf6   :  { %v1013_v38 = vpop.f32.mrf.mxu0 }
  0xf7   :  { %v254_v41 = vpack.c.bf16 %v1013_v38, %v1012_v36 }
  0xf8   :  { %v221_v39 = vpop.f32.mrf.mxu0 }
  0xf9   :  { %v253_v40 = vpack.c.bf16 %v221_v39, %v218_v37 }
  0xfa   :  { %v1016_v42 = vpop.f32.mrf.mxu0 }
  0xfb   :  { %1042 = vmatprep.mubr.bf16.mxu1 %v253_v40 }
  0xfc   :  { %v234_v43 = vpop.f32.mrf.mxu0  ;;  %1043 = vmatmul.mubr.bf16.gmra.mxu1 %v254_v41 }
  0xfe   :  { %v1017_v44 = vpop.f32.mrf.mxu0 }
  0xff   :  { %v256_v47 = vpack.c.bf16 %v1017_v44, %v1016_v42 }
 0x100   :  { %v237_v45 = vpop.f32.mrf.mxu0 }
 0x101   :  { %v255_v46 = vpack.c.bf16 %v237_v45, %v234_v43 }
 0x103   :  { %1046 = vmatprep.mubr.bf16.mxu1 %v255_v46 }
 0x104   :  { %1047 = vmatmul.mubr.bf16.gmra.mxu1 %v256_v47 }
 0x1ac   :  { %v1036_v51 = vpop.f32.mrf.mxu1 }
 0x1ad   :  { %v1283_v52 = vadd.f32 %v1036_v51, %v943_v50 }
 0x1ae   :  { %v362_v53 = vpop.f32.mrf.mxu1 }
 0x1af   :  { %v1285_v54 = vadd.f32 %v943_v50, %v362_v53  ;;  %v432_v55 = vsel %vm429_vm0, %v1283_v52, 0.0 }
 0x1b0   :  { %450 = vadd.xlane.f32.xlu1 %v432_v55  ;;  %v1037_v56 = vpop.f32.mrf.mxu1 }
 0x1b1   :  { %v1290_v57 = vadd.f32 %v1037_v56, %v943_v50  ;;  %v430_v58 = vsel %vm429_vm0, %v1285_v54, 0.0 }
 0x1b2   :  { %v365_v59 = vpop.f32.mrf.mxu1  ;;  %446 = vadd.xlane.f32.xlu0 %v430_v58 }
 0x1b3   :  { %v1295_v60 = vadd.f32 %v943_v50, %v365_v59  ;;  %v433_v61 = vsel %vm429_vm0, %v1290_v57, 0.0 }
 0x1b4   :  { %452 = vadd.xlane.f32.xlu1 %v433_v61  ;;  %v1040_v62 = vpop.f32.mrf.mxu1 }
 0x1b5   :  { %v1300_v63 = vadd.f32 %v1040_v62, %v943_v50  ;;  %v431_v0 = vsel %vm429_vm0, %v1295_v60, 0.0 }
 0x1b6   :  { %448 = vadd.xlane.f32.xlu0 %v431_v0  ;;  %v378_v1 = vpop.f32.mrf.mxu1 }
 0x1b7   :  { %v1305_v3 = vadd.f32 %v943_v50, %v378_v1  ;;  %v436_v5 = vsel %vm429_vm0, %v1300_v63, 0.0 }
 0x1b8   :  { %v1041_v2 = vpop.f32.mrf.mxu1 }
 0x1b9   :  { %v1307_v4 = vadd.f32 %v1041_v2, %v943_v50  ;;  %v434_v11 = vsel %vm429_vm0, %v1305_v3, 0.0 }
 0x1ba   :  { %458 = vadd.xlane.f32.xlu0 %v436_v5  ;;  %v381_v6 = vpop.f32.mrf.mxu1 }
 0x1bb   :  { %v1312_v7 = vadd.f32 %v943_v50, %v381_v6  ;;  %v437_v8 = vsel %vm429_vm0, %v1307_v4, 0.0 }
 0x1bc   :  { %460 = vadd.xlane.f32.xlu1 %v437_v8  ;;  %v1044_v9 = vpop.f32.mrf.mxu1 }
 0x1bd   :  { %v1317_v10 = vadd.f32 %v1044_v9, %v943_v50  ;;  %v435_v13 = vsel %vm429_vm0, %v1312_v7, 0.0 }
 0x1be   :  { %454 = vadd.xlane.f32.xlu0 %v434_v11  ;;  %v394_v12 = vpop.f32.mrf.mxu1 }
 0x1bf   :  { %v1325_v15 = vadd.f32 %v943_v50, %v394_v12  ;;  %v440_v17 = vsel %vm429_vm0, %v1317_v10, 0.0 }
 0x1c0   :  { %456 = vadd.xlane.f32.xlu1 %v435_v13  ;;  %v1045_v14 = vpop.f32.mrf.mxu1 }
 0x1c1   :  { %v1327_v16 = vadd.f32 %v1045_v14, %v943_v50  ;;  %v438_v22 = vsel %vm429_vm0, %v1325_v15, 0.0 }
 0x1c2   :  { %466 = vadd.xlane.f32.xlu0 %v440_v17  ;;  %v397_v18 = vpop.f32.mrf.mxu1 }
 0x1c3   :  { %v1332_v19 = vadd.f32 %v943_v50, %v397_v18  ;;  %v441_v20 = vsel %vm429_vm0, %v1327_v16, 0.0 }
 0x1c4   :  { %468 = vadd.xlane.f32.xlu1 %v441_v20  ;;  %v1048_v21 = vpop.f32.mrf.mxu1 }
 0x1c5   :  { %v439_v25 = vsel %vm429_vm0, %v1332_v19, 0.0  ;;  %v1345_v27 = vadd.f32 %v1048_v21, %v943_v50 }
 0x1c6   :  { %462 = vadd.xlane.f32.xlu0 %v438_v22  ;;  %v410_v23 = vpop.f32.mrf.mxu1 }
 0x1c7   :  { %v1340_v24 = vadd.f32 %v943_v50, %v410_v23  ;;  %v444_v33 = vsel %vm429_vm0, %v1345_v27, 0.0 }
 0x1c8   :  { %464 = vadd.xlane.f32.xlu1 %v439_v25  ;;  %v1049_v26 = vpop.f32.mrf.mxu1 }
 0x1c9   :  { %v442_v28 = vsel %vm429_vm0, %v1340_v24, 0.0  ;;  %v1352_v31 = vadd.f32 %v1049_v26, %v943_v50 }
 0x1ca   :  { %v413_v29 = vpop.f32.mrf.mxu1  ;;  %470 = vadd.xlane.f32.xlu0 %v442_v28 }
 0x1cb   :  { %v1350_v30 = vadd.f32 %v943_v50, %v413_v29  ;;  %v445_v34 = vsel %vm429_vm0, %v1352_v31, 0.0 }
 0x1cd   :  { %v443_v32 = vsel %vm429_vm0, %v1350_v30, 0.0 }
 0x1ce   :  { %472 = vadd.xlane.f32.xlu1 %v443_v32  ;;  %474 = vadd.xlane.f32.xlu0 %v444_v33 }
 0x1d2   :  { %476 = vadd.xlane.f32.xlu1 %v445_v34 }
 0x239   :  { %v451_v35 = vpop.xlane.xlu1 %450 }
 0x23a   :  { %v481_v36 = vmul.f32 0.125, %v451_v35 }
 0x23b   :  { %v447_v37 = vpop.xlane.xlu0 %446 }
 0x23c   :  { %v1364_v38 = vsub.f32 %v1283_v52, %v481_v36  ;;  %v479_v39 = vmul.f32 0.125, %v447_v37 }
 0x23d   :  { %v453_v40 = vpop.xlane.xlu1 %452 }
 0x23e   :  { %v1367_v41 = vsub.f32 %v1285_v54, %v479_v39  ;;  %v482_v42 = vmul.f32 0.125, %v453_v40  ;;  %v513_v43 = vsel %vm429_vm0, %v1364_v38, 0.0 }
 0x23f   :  { %v449_v44 = vpop.xlane.xlu0 %448  ;;  %v529_v45 = vmul.f32 %v513_v43, %v513_v43 }
 0x240   :  { %v1373_v46 = vsub.f32 %v1290_v57, %v482_v42  ;;  %v480_v47 = vmul.f32 0.125, %v449_v44  ;;  %v511_v48 = vsel %vm429_vm0, %v1367_v41, 0.0 }
 0x241   :  { %547 = vadd.xlane.f32.xlu0 %v529_v45  ;;  %v527_v54 = vmul.f32 %v511_v48, %v511_v48 }
 0x242   :  { %v1379_v50 = vsub.f32 %v1295_v60, %v480_v47  ;;  %v514_v51 = vsel %vm429_vm0, %v1373_v46, 0.0 }
 0x243   :  { %v459_v52 = vpop.xlane.xlu0 %458  ;;  %v530_v53 = vmul.f32 %v514_v51, %v514_v51 }
 0x244   :  { %v485_v55 = vmul.f32 0.125, %v459_v52  ;;  %v512_v56 = vsel %vm429_vm0, %v1379_v50, 0.0 }
 0x245   :  { %v461_v57 = vpop.xlane.xlu1 %460  ;;  %549 = vadd.xlane.f32.xlu1 %v530_v53  ;;  %543 = vadd.xlane.f32.xlu0 %v527_v54  ;;  %v528_v61 = vmul.f32 %v512_v56, %v512_v56 }
 0x246   :  { %v1388_v58 = vsub.f32 %v1300_v63, %v485_v55  ;;  %v486_v59 = vmul.f32 0.125, %v461_v57 }
 0x247   :  { %v455_v60 = vpop.xlane.xlu0 %454 }
 0x248   :  { %v1391_v62 = vsub.f32 %v1307_v4, %v486_v59  ;;  %v483_v0 = vmul.f32 0.125, %v455_v60  ;;  %v517_v1 = vsel %vm429_vm0, %v1388_v58, 0.0 }
 0x249   :  { %v457_v2 = vpop.xlane.xlu1 %456  ;;  %545 = vadd.xlane.f32.xlu1 %v528_v61  ;;  %v533_v5 = vmul.f32 %v517_v1, %v517_v1 }
 0x24a   :  { %v1397_v6 = vsub.f32 %v1305_v3, %v483_v0  ;;  %v484_v8 = vmul.f32 0.125, %v457_v2  ;;  %v518_v63 = vsel %vm429_vm0, %v1391_v62, 0.0 }
 0x24b   :  { %v467_v9 = vpop.xlane.xlu0 %466  ;;  %555 = vadd.xlane.f32.xlu0 %v533_v5  ;;  %v534_v4 = vmul.f32 %v518_v63, %v518_v63 }
 0x24c   :  { %v1403_v11 = vsub.f32 %v1312_v7, %v484_v8  ;;  %v489_v12 = vmul.f32 0.125, %v467_v9  ;;  %v515_v13 = vsel %vm429_vm0, %v1397_v6, 0.0 }
 0x24d   :  { %v469_v14 = vpop.xlane.xlu1 %468  ;;  %557 = vadd.xlane.f32.xlu1 %v534_v4  ;;  %v531_v3 = vmul.f32 %v515_v13, %v515_v13 }
 0x24e   :  { %v1409_v17 = vsub.f32 %v1317_v10, %v489_v12  ;;  %v490_v18 = vmul.f32 0.125, %v469_v14  ;;  %v516_v20 = vsel %vm429_vm0, %v1403_v11, 0.0 }
 0x24f   :  { %v463_v21 = vpop.xlane.xlu0 %462  ;;  %551 = vadd.xlane.f32.xlu0 %v531_v3  ;;  %v532_v7 = vmul.f32 %v516_v20, %v516_v20 }
 0x250   :  { %v1415_v22 = vsub.f32 %v1327_v16, %v490_v18  ;;  %v487_v23 = vmul.f32 0.125, %v463_v21  ;;  %v521_v25 = vsel %vm429_vm0, %v1409_v17, 0.0 }
 0x251   :  { %v465_v26 = vpop.xlane.xlu1 %464  ;;  %553 = vadd.xlane.f32.xlu1 %v532_v7  ;;  %v537_v10 = vmul.f32 %v521_v25, %v521_v25 }
 0x252   :  { %v1421_v28 = vsub.f32 %v1325_v15, %v487_v23  ;;  %v488_v29 = vmul.f32 0.125, %v465_v26  ;;  %v522_v32 = vsel %vm429_vm0, %v1415_v22, 0.0 }
 0x253   :  { %563 = vadd.xlane.f32.xlu0 %v537_v10  ;;  %v471_v33 = vpop.xlane.xlu0 %470  ;;  %v538_v16 = vmul.f32 %v522_v32, %v522_v32  ;;  %v1462_v32 = vld [vmem:[%s1857_s4] ss:$0 sm:$0xff] }
 0x254   :  { %v1427_v34 = vsub.f32 %v1332_v19, %v488_v29  ;;  %v491_v35 = vmul.f32 0.125, %v471_v33  ;;  %v519_v36 = vsel %vm429_vm0, %v1421_v28, 0.0 }
 0x255   :  { %565 = vadd.xlane.f32.xlu1 %v538_v16  ;;  %v535_v37 = vmul.f32 %v519_v36, %v519_v36 }
 0x256   :  { %v1433_v15 = vsub.f32 %v1340_v24, %v491_v35  ;;  %v520_v39 = vsel %vm429_vm0, %v1427_v34, 0.0 }
 0x257   :  { %v473_v40 = vpop.xlane.xlu1 %472  ;;  %559 = vadd.xlane.f32.xlu0 %v535_v37  ;;  %v475_v42 = vpop.xlane.xlu0 %474  ;;  %v536_v43 = vmul.f32 %v520_v39, %v520_v39  ;;  %v1468_v37 = vld [vmem:[%s1858_s5] ss:$0 sm:$0xff] }
 0x258   :  { %v492_v19 = vmul.f32 0.125, %v473_v40  ;;  %v493_v44 = vmul.f32 0.125, %v475_v42  ;;  %v523_v45 = vsel %vm429_vm0, %v1433_v15, 0.0 }
 0x259   :  { %561 = vadd.xlane.f32.xlu1 %v536_v43  ;;  %v539_v47 = vmul.f32 %v523_v45, %v523_v45 }
 0x25a   :  { %v1442_v48 = vsub.f32 %v1350_v30, %v492_v19  ;;  %v1445_v24 = vsub.f32 %v1345_v27, %v493_v44 }
 0x25b   :  { %v477_v51 = vpop.xlane.xlu1 %476  ;;  %567 = vadd.xlane.f32.xlu0 %v539_v47 }
 0x25c   :  { %v494_v52 = vmul.f32 0.125, %v477_v51  ;;  %v524_v53 = vsel %vm429_vm0, %v1442_v48, 0.0  ;;  %v525_v54 = vsel %vm429_vm0, %v1445_v24, 0.0 }
 0x25d   :  { %v540_v55 = vmul.f32 %v524_v53, %v524_v53  ;;  %v541_v56 = vmul.f32 %v525_v54, %v525_v54 }
 0x25e   :  { %v1454_v57 = vsub.f32 %v1352_v31, %v494_v52 }
 0x25f   :  { %569 = vadd.xlane.f32.xlu1 %v540_v55  ;;  %571 = vadd.xlane.f32.xlu0 %v541_v56 }
 0x260   :  { %v526_v27 = vsel %vm429_vm0, %v1454_v57, 0.0 }
 0x261   :  { %v542_v30 = vmul.f32 %v526_v27, %v526_v27 }
 0x263   :  { %573 = vadd.xlane.f32.xlu1 %v542_v30 }
 0x2ca   :  { %v548_v59 = vpop.xlane.xlu0 %547 }
 0x2cb   :  { %v577_v60 = vmul.f32 0.125, %v548_v59 }
 0x2cd   :  { %v593_v61 = vadd.f32 1e-05, %v577_v60 }
 0x2ce   :  { %v550_v0 = vpop.xlane.xlu1 %549  ;;  %v544_v1 = vpop.xlane.xlu0 %543 }
 0x2cf   :  { %1074 = vrsqrt.f32 %v593_v61  ;;  %v578_v2 = vmul.f32 0.125, %v550_v0  ;;  %v575_v5 = vmul.f32 0.125, %v544_v1 }
 0x2d1   :  { %v594_v8 = vadd.f32 1e-05, %v578_v2  ;;  %v591_v63 = vadd.f32 1e-05, %v575_v5 }
 0x2d2   :  { %v546_v31 = vpop.xlane.xlu1 %545 }
 0x2d3   :  { %1076 = vrsqrt.f32 %v594_v8  ;;  %v576_v9 = vmul.f32 0.125, %v546_v31 }
 0x2d4   :  { %1078 = vrsqrt.f32 %v591_v63  ;;  %v556_v4 = vpop.xlane.xlu0 %555 }
 0x2d5   :  { %v592_v12 = vadd.f32 1e-05, %v576_v9  ;;  %v581_v13 = vmul.f32 0.125, %v556_v4 }
 0x2d6   :  { %v558_v14 = vpop.xlane.xlu1 %557 }
 0x2d7   :  { %1080 = vrsqrt.f32 %v592_v12  ;;  %v597_v3 = vadd.f32 1e-05, %v581_v13  ;;  %v582_v18 = vmul.f32 0.125, %v558_v14 }
 0x2d8   :  { %v552_v20 = vpop.xlane.xlu0 %551 }
 0x2d9   :  { %1082 = vrsqrt.f32 %v597_v3  ;;  %v598_v21 = vadd.f32 1e-05, %v582_v18  ;;  %v579_v7 = vmul.f32 0.125, %v552_v20 }
 0x2da   :  { %v554_v23 = vpop.xlane.xlu1 %553 }
 0x2db   :  { %1084 = vrsqrt.f32 %v598_v21  ;;  %v595_v25 = vadd.f32 1e-05, %v579_v7  ;;  %v580_v26 = vmul.f32 0.125, %v554_v23 }
 0x2dc   :  { %v1075_v10 = vpop.eup %1074  ;;  %v564_v29 = vpop.xlane.xlu0 %563 }
 0x2dd   :  { %1086 = vrsqrt.f32 %v595_v25  ;;  %v596_v33 = vadd.f32 1e-05, %v580_v26  ;;  %v585_v16 = vmul.f32 0.125, %v564_v29  ;;  %v625_v35 = vmul.f32 %v1075_v10, %v1364_v38 }
 0x2de   :  { %v566_v36 = vpop.xlane.xlu1 %565 }
 0x2df   :  { %1088 = vrsqrt.f32 %v596_v33  ;;  %v601_v39 = vadd.f32 1e-05, %v585_v16  ;;  %v586_v40 = vmul.f32 0.125, %v566_v36  ;;  %v647_v42 = vmul.f32 %v1462_v32, %v625_v35 }
 0x2e0   :  { %v1077_v43 = vpop.eup %1076  ;;  %v560_v19 = vpop.xlane.xlu0 %559 }
 0x2e1   :  { %v1079_v44 = vpop.eup %1078  ;;  %1090 = vrsqrt.f32 %v601_v39  ;;  %v602_v45 = vadd.f32 1e-05, %v586_v40  ;;  %v583_v47 = vmul.f32 0.125, %v560_v19  ;;  %v1472_v51 = vadd.f32 %v1468_v37, %v647_v42 }
 0x2e2   :  { %v562_v38 = vpop.xlane.xlu1 %561  ;;  %v626_v52 = vmul.f32 %v1077_v43, %v1373_v46  ;;  %v623_v53 = vmul.f32 %v1079_v44, %v1367_v41 }
 0x2e3   :  { %1092 = vrsqrt.f32 %v602_v45  ;;  %v599_v54 = vadd.f32 1e-05, %v583_v47  ;;  %v584_v55 = vmul.f32 0.125, %v562_v38  ;;  %v1479_v56 = vsel %vm429_vm0, %v1472_v51, -1e+30 }
 0x2e4   :  { %v1081_v27 = vpop.eup %1080  ;;  %703 = vmax.xlane.f32.xlu0 %v1479_v56  ;;  %v568_v30 = vpop.xlane.xlu0 %567  ;;  %v648_v59 = vmul.f32 %v1462_v32, %v626_v52  ;;  %v645_v60 = vmul.f32 %v1462_v32, %v623_v53 }
 0x2e5   :  { %1094 = vrsqrt.f32 %v599_v54  ;;  %v600_v46 = vadd.f32 1e-05, %v584_v55  ;;  %v587_v61 = vmul.f32 0.125, %v568_v30  ;;  %v624_v41 = vmul.f32 %v1081_v27, %v1379_v50 }
 0x2e6   :  { %v1083_v0 = vpop.eup %1082  ;;  %v1486_v1 = vadd.f32 %v1468_v37, %v648_v59  ;;  %v1489_v2 = vadd.f32 %v1468_v37, %v645_v60 }
 0x2e7   :  { %1096 = vrsqrt.f32 %v600_v46  ;;  %v603_v5 = vadd.f32 1e-05, %v587_v61  ;;  %v646_v8 = vmul.f32 %v1462_v32, %v624_v41  ;;  %v629_v63 = vmul.f32 %v1083_v0, %v1388_v58 }
 0x2e8   :  { %v1085_v31 = vpop.eup %1084  ;;  %v1496_v9 = vsel %vm429_vm0, %v1486_v1, -1e+30  ;;  %v570_v50 = vpop.xlane.xlu1 %569  ;;  %v1501_v4 = vsel %vm429_vm0, %v1489_v2, -1e+30 }
 0x2e9   :  { %v572_v12 = vpop.xlane.xlu0 %571  ;;  %1098 = vrsqrt.f32 %v603_v5  ;;  %705 = vmax.xlane.f32.xlu1 %v1496_v9  ;;  %v588_v13 = vmul.f32 0.125, %v570_v50  ;;  %699 = vmax.xlane.f32.xlu0 %v1501_v4  ;;  %v1506_v14 = vadd.f32 %v1468_v37, %v646_v8  ;;  %v651_v18 = vmul.f32 %v1462_v32, %v629_v63 }
 0x2ea   :  { %v589_v58 = vmul.f32 0.125, %v572_v12  ;;  %v1087_v3 = vpop.eup %1086  ;;  %v630_v20 = vmul.f32 %v1085_v31, %v1391_v62 }
 0x2eb   :  { %v604_v21 = vadd.f32 1e-05, %v588_v13  ;;  %v1513_v23 = vsel %vm429_vm0, %v1506_v14, -1e+30  ;;  %v627_v25 = vmul.f32 %v1087_v3, %v1397_v6  ;;  %v1517_v29 = vadd.f32 %v1468_v37, %v651_v18 }
 0x2ec   :  { %v605_v7 = vadd.f32 1e-05, %v589_v58  ;;  %v1089_v26 = vpop.eup %1088  ;;  %v574_v10 = vpop.xlane.xlu1 %573  ;;  %v652_v33 = vmul.f32 %v1462_v32, %v630_v20 }
 0x2ed   :  { %1100 = vrsqrt.f32 %v604_v21  ;;  %701 = vmax.xlane.f32.xlu1 %v1513_v23  ;;  %v590_v62 = vmul.f32 0.125, %v574_v10  ;;  %v649_v16 = vmul.f32 %v1462_v32, %v627_v25  ;;  %v628_v35 = vmul.f32 %v1089_v26, %v1403_v11 }
 0x2ee   :  { %v1091_v36 = vpop.eup %1090  ;;  %1102 = vrsqrt.f32 %v605_v7  ;;  %v1526_v6 = vsel %vm429_vm0, %v1517_v29, -1e+30  ;;  %v1529_v39 = vadd.f32 %v1468_v37, %v652_v33 }
 0x2ef   :  { %v606_v40 = vadd.f32 1e-05, %v590_v62  ;;  %711 = vmax.xlane.f32.xlu0 %v1526_v6  ;;  %v1533_v42 = vadd.f32 %v1468_v37, %v649_v16  ;;  %v650_v43 = vmul.f32 %v1462_v32, %v628_v35  ;;  %v633_v11 = vmul.f32 %v1091_v36, %v1409_v17 }
 0x2f0   :  { %v1093_v19 = vpop.eup %1092  ;;  %v1540_v44 = vsel %vm429_vm0, %v1529_v39, -1e+30 }
 0x2f1   :  { %1104 = vrsqrt.f32 %v606_v40  ;;  %713 = vmax.xlane.f32.xlu1 %v1540_v44  ;;  %v1546_v45 = vsel %vm429_vm0, %v1533_v42, -1e+30  ;;  %v1549_v47 = vadd.f32 %v1468_v37, %v650_v43  ;;  %v655_v38 = vmul.f32 %v1462_v32, %v633_v11 }
 0x2f2   :  { %v1095_v17 = vpop.eup %1094  ;;  %v634_v52 = vmul.f32 %v1093_v19, %v1415_v22 }
 0x2f3   :  { %707 = vmax.xlane.f32.xlu0 %v1546_v45  ;;  %v1557_v53 = vsel %vm429_vm0, %v1549_v47, -1e+30  ;;  %v1560_v54 = vadd.f32 %v1468_v37, %v655_v38  ;;  %v631_v55 = vmul.f32 %v1095_v17, %v1421_v28 }
 0x2f4   :  { %v1097_v27 = vpop.eup %1096  ;;  %v656_v30 = vmul.f32 %v1462_v32, %v634_v52 }
 0x2f5   :  { %709 = vmax.xlane.f32.xlu1 %v1557_v53  ;;  %v1568_v22 = vsel %vm429_vm0, %v1560_v54, -1e+30  ;;  %v653_v59 = vmul.f32 %v1462_v32, %v631_v55  ;;  %v632_v60 = vmul.f32 %v1097_v27, %v1427_v34 }
 0x2f6   :  { %v1099_v46 = vpop.eup %1098  ;;  %v1573_v61 = vadd.f32 %v1468_v37, %v656_v30 }
 0x2f7   :  { %719 = vmax.xlane.f32.xlu0 %v1568_v22  ;;  %v1577_v28 = vadd.f32 %v1468_v37, %v653_v59  ;;  %v654_v41 = vmul.f32 %v1462_v32, %v632_v60  ;;  %v635_v0 = vmul.f32 %v1099_v46, %v1433_v15 }
 0x2f8   :  { %v1584_v5 = vsel %vm429_vm0, %v1573_v61, -1e+30 }
 0x2f9   :  { %721 = vmax.xlane.f32.xlu1 %v1584_v5  ;;  %v1590_v34 = vsel %vm429_vm0, %v1577_v28, -1e+30  ;;  %v1593_v8 = vadd.f32 %v1468_v37, %v654_v41  ;;  %v657_v63 = vmul.f32 %v1462_v32, %v635_v0 }
 0x2fa   :  { %v1101_v31 = vpop.eup %1100 }
 0x2fb   :  { %v1103_v50 = vpop.eup %1102  ;;  %715 = vmax.xlane.f32.xlu0 %v1590_v34  ;;  %v1600_v15 = vsel %vm429_vm0, %v1593_v8, -1e+30  ;;  %v1603_v12 = vadd.f32 %v1468_v37, %v657_v63  ;;  %v636_v13 = vmul.f32 %v1101_v31, %v1442_v48 }
 0x2fc   :  { %v637_v58 = vmul.f32 %v1103_v50, %v1445_v24 }
 0x2fd   :  { %717 = vmax.xlane.f32.xlu1 %v1600_v15  ;;  %v1611_v3 = vsel %vm429_vm0, %v1603_v12, -1e+30  ;;  %v658_v18 = vmul.f32 %v1462_v32, %v636_v13 }
 0x2fe   :  { %v1105_v20 = vpop.eup %1104  ;;  %v659_v21 = vmul.f32 %v1462_v32, %v637_v58 }
 0x2ff   :  { %723 = vmax.xlane.f32.xlu0 %v1611_v3  ;;  %v1617_v7 = vadd.f32 %v1468_v37, %v658_v18  ;;  %v638_v48 = vmul.f32 %v1105_v20, %v1454_v57 }
 0x300   :  { %v1621_v24 = vadd.f32 %v1468_v37, %v659_v21 }
 0x301   :  { %v1626_v25 = vsel %vm429_vm0, %v1617_v7, -1e+30  ;;  %v660_v26 = vmul.f32 %v1462_v32, %v638_v48 }
 0x302   :  { %725 = vmax.xlane.f32.xlu1 %v1626_v25  ;;  %v1633_v10 = vsel %vm429_vm0, %v1621_v24, -1e+30 }
 0x303   :  { %727 = vmax.xlane.f32.xlu0 %v1633_v10  ;;  %v1637_v57 = vadd.f32 %v1468_v37, %v660_v26 }
 0x305   :  { %v1642_v33 = vsel %vm429_vm0, %v1637_v57, -1e+30 }
 0x306   :  { %729 = vmax.xlane.f32.xlu1 %v1642_v33 }
 0x36d   :  { %v1645_v32 = vpop.xlane.xlu0 %703 }
 0x36e   :  { %v733_v62 = vsub.f32 %v1479_v56, %v1645_v32 }
 0x370   :  { %v751_v16 = vmul.f32 1.442695, %v733_v62 }
 0x372   :  { %1106 = vpow2.f32 %v751_v16  ;;  %v1649_v35 = vpop.xlane.xlu1 %705  ;;  %v1651_v36 = vpop.xlane.xlu0 %699 }
 0x373   :  { %v734_v37 = vsub.f32 %v1496_v9, %v1649_v35  ;;  %v731_v40 = vsub.f32 %v1501_v4, %v1651_v36 }
 0x375   :  { %v753_v43 = vmul.f32 1.442695, %v734_v37  ;;  %v747_v11 = vmul.f32 1.442695, %v731_v40 }
 0x376   :  { %v1657_v19 = vpop.xlane.xlu1 %701 }
 0x377   :  { %1108 = vpow2.f32 %v753_v43  ;;  %v732_v56 = vsub.f32 %v1513_v23, %v1657_v19 }
 0x378   :  { %1110 = vpow2.f32 %v747_v11  ;;  %v1661_v38 = vpop.xlane.xlu0 %711 }
 0x379   :  { %v749_v17 = vmul.f32 1.442695, %v732_v56  ;;  %v737_v52 = vsub.f32 %v1526_v6, %v1661_v38 }
 0x37a   :  { %v1665_v55 = vpop.xlane.xlu1 %713 }
 0x37b   :  { %1112 = vpow2.f32 %v749_v17  ;;  %v759_v9 = vmul.f32 1.442695, %v737_v52  ;;  %v738_v4 = vsub.f32 %v1540_v44, %v1665_v55 }
 0x37c   :  { %v1669_v27 = vpop.xlane.xlu0 %707 }
 0x37d   :  { %1114 = vpow2.f32 %v759_v9  ;;  %v761_v30 = vmul.f32 1.442695, %v738_v4  ;;  %v735_v23 = vsub.f32 %v1546_v45, %v1669_v27 }
 0x37e   :  { %v1673_v59 = vpop.xlane.xlu1 %709 }
 0x37f   :  { %v1107_v60 = vpop.eup %1106  ;;  %1116 = vpow2.f32 %v761_v30  ;;  %v755_v46 = vmul.f32 1.442695, %v735_v23  ;;  %v736_v6 = vsub.f32 %v1557_v53, %v1673_v59 }
 0x380   :  { %v1677_v41 = vpop.xlane.xlu0 %719  ;;  %v781_v44 = vsel %vm429_vm0, %v1107_v60, 0.0 }
 0x381   :  { %1118 = vpow2.f32 %v755_v46  ;;  %v757_v0 = vmul.f32 1.442695, %v736_v6  ;;  %v741_v63 = vsub.f32 %v1568_v22, %v1677_v41  ;;  %799 = vadd.xlane.f32.xlu0 %v781_v44 }
 0x382   :  { %v1683_v45 = vpop.xlane.xlu1 %721 }
 0x383   :  { %1120 = vpow2.f32 %v757_v0  ;;  %v767_v31 = vmul.f32 1.442695, %v741_v63  ;;  %v742_v50 = vsub.f32 %v1584_v5, %v1683_v45 }
 0x384   :  { %v1109_v13 = vpop.eup %1108  ;;  %v1687_v53 = vpop.xlane.xlu0 %715 }
 0x385   :  { %v1111_v58 = vpop.eup %1110  ;;  %1122 = vpow2.f32 %v767_v31  ;;  %v769_v18 = vmul.f32 1.442695, %v742_v50  ;;  %v739_v20 = vsub.f32 %v1590_v34, %v1687_v53  ;;  %v782_v22 = vsel %vm429_vm0, %v1109_v13, 0.0 }
 0x386   :  { %v1693_v21 = vpop.xlane.xlu1 %717  ;;  %v779_v48 = vsel %vm429_vm0, %v1111_v58, 0.0  ;;  %801 = vadd.xlane.f32.xlu1 %v782_v22 }
 0x387   :  { %1124 = vpow2.f32 %v769_v18  ;;  %v763_v26 = vmul.f32 1.442695, %v739_v20  ;;  %v740_v5 = vsub.f32 %v1600_v15, %v1693_v21  ;;  %795 = vadd.xlane.f32.xlu0 %v779_v48 }
 0x388   :  { %v1113_v62 = vpop.eup %1112  ;;  %v1699_v16 = vpop.xlane.xlu0 %723 }
 0x389   :  { %1126 = vpow2.f32 %v763_v26  ;;  %v765_v34 = vmul.f32 1.442695, %v740_v5  ;;  %v743_v37 = vsub.f32 %v1611_v3, %v1699_v16  ;;  %v780_v43 = vsel %vm429_vm0, %v1113_v62, 0.0 }
 0x38a   :  { %v1115_v40 = vpop.eup %1114  ;;  %797 = vadd.xlane.f32.xlu1 %v780_v43 }
 0x38b   :  { %1128 = vpow2.f32 %v765_v34  ;;  %v771_v11 = vmul.f32 1.442695, %v743_v37  ;;  %v1705_v56 = vpop.xlane.xlu1 %725  ;;  %v785_v15 = vsel %vm429_vm0, %v1115_v40, 0.0 }
 0x38c   :  { %v1117_v17 = vpop.eup %1116  ;;  %v744_v52 = vsub.f32 %v1626_v25, %v1705_v56  ;;  %807 = vadd.xlane.f32.xlu0 %v785_v15  ;;  %v1711_v9 = vpop.xlane.xlu0 %727 }
 0x38d   :  { %1130 = vpow2.f32 %v771_v11  ;;  %v745_v3 = vsub.f32 %v1633_v10, %v1711_v9  ;;  %v786_v4 = vsel %vm429_vm0, %v1117_v17, 0.0 }
 0x38e   :  { %v1119_v30 = vpop.eup %1118  ;;  %v773_v23 = vmul.f32 1.442695, %v744_v52  ;;  %809 = vadd.xlane.f32.xlu1 %v786_v4 }
 0x38f   :  { %v775_v60 = vmul.f32 1.442695, %v745_v3  ;;  %v1717_v46 = vpop.xlane.xlu1 %729  ;;  %v783_v6 = vsel %vm429_vm0, %v1119_v30, 0.0  ;;  %v861_v30 = vsub.f32 %v1472_v51, %v1645_v32  ;;  %v862_v51 = vsub.f32 %v1486_v1, %v1649_v35 }
 0x390   :  { %v1121_v25 = vpop.eup %1120  ;;  %1132 = vpow2.f32 %v773_v23  ;;  %v746_v44 = vsub.f32 %v1642_v33, %v1717_v46  ;;  %803 = vadd.xlane.f32.xlu0 %v783_v6  ;;  %v865_v35 = vsub.f32 %v1517_v29, %v1661_v38  ;;  %v866_v38 = vsub.f32 %v1529_v39, %v1665_v55 }
 0x391   :  { %1134 = vpow2.f32 %v775_v60  ;;  %v784_v10 = vsel %vm429_vm0, %v1121_v25, 0.0 }
 0x392   :  { %v1123_v0 = vpop.eup %1122  ;;  %v777_v63 = vmul.f32 1.442695, %v746_v44  ;;  %805 = vadd.xlane.f32.xlu1 %v784_v10 }
 0x393   :  { %v789_v31 = vsel %vm429_vm0, %v1123_v0, 0.0 }
 0x394   :  { %v1125_v50 = vpop.eup %1124  ;;  %1136 = vpow2.f32 %v777_v63  ;;  %815 = vadd.xlane.f32.xlu0 %v789_v31  ;;  %v859_v31 = vsub.f32 %v1489_v2, %v1651_v36 }
 0x395   :  { %v790_v13 = vsel %vm429_vm0, %v1125_v50, 0.0 }
 0x396   :  { %v1127_v58 = vpop.eup %1126  ;;  %817 = vadd.xlane.f32.xlu1 %v790_v13 }
 0x397   :  { %v787_v33 = vsel %vm429_vm0, %v1127_v58, 0.0 }
 0x398   :  { %v1129_v18 = vpop.eup %1128  ;;  %811 = vadd.xlane.f32.xlu0 %v787_v33 }
 0x399   :  { %v788_v20 = vsel %vm429_vm0, %v1129_v18, 0.0 }
 0x39a   :  { %v1131_v22 = vpop.eup %1130  ;;  %813 = vadd.xlane.f32.xlu1 %v788_v20 }
 0x39b   :  { %v791_v48 = vsel %vm429_vm0, %v1131_v22, 0.0 }
 0x39c   :  { %819 = vadd.xlane.f32.xlu0 %v791_v48  ;;  %v860_v48 = vsub.f32 %v1506_v14, %v1657_v19 }
 0x39d   :  { %v1133_v26 = vpop.eup %1132 }
 0x39e   :  { %v1135_v5 = vpop.eup %1134  ;;  %v792_v62 = vsel %vm429_vm0, %v1133_v26, 0.0 }
 0x39f   :  { %821 = vadd.xlane.f32.xlu1 %v792_v62  ;;  %v793_v34 = vsel %vm429_vm0, %v1135_v5, 0.0 }
 0x3a0   :  { %823 = vadd.xlane.f32.xlu0 %v793_v34 }
 0x3a1   :  { %v1137_v37 = vpop.eup %1136 }
 0x3a2   :  { %v794_v40 = vsel %vm429_vm0, %v1137_v37, 0.0 }
 0x3a3   :  { %825 = vadd.xlane.f32.xlu1 %v794_v40 }
 0x40a   :  { %v800_v43 = vpop.xlane.xlu0 %799 }
 0x40b   :  { %1138 = vlog2.f32 %v800_v43  ;;  %v863_v43 = vsub.f32 %v1533_v42, %v1669_v27  ;;  %v864_v27 = vsub.f32 %v1549_v47, %v1673_v59 }
 0x40f   :  { %v802_v11 = vpop.xlane.xlu1 %801 }
 0x410   :  { %v796_v15 = vpop.xlane.xlu0 %795  ;;  %1140 = vlog2.f32 %v802_v11 }
 0x411   :  { %1142 = vlog2.f32 %v796_v15 }
 0x413   :  { %v798_v17 = vpop.xlane.xlu1 %797 }
 0x414   :  { %1144 = vlog2.f32 %v798_v17 }
 0x415   :  { %v808_v52 = vpop.xlane.xlu0 %807 }
 0x416   :  { %1146 = vlog2.f32 %v808_v52 }
 0x417   :  { %v810_v4 = vpop.xlane.xlu1 %809 }
 0x418   :  { %v1139_v3 = vpop.eup %1138  ;;  %1148 = vlog2.f32 %v810_v4 }
 0x419   :  { %v832_v23 = vmul.f32 0.6931472, %v1139_v3  ;;  %v804_v60 = vpop.xlane.xlu0 %803 }
 0x41a   :  { %1150 = vlog2.f32 %v804_v60 }
 0x41b   :  { %v877_v6 = vsub.f32 %v861_v30, %v832_v23  ;;  %v806_v25 = vpop.xlane.xlu1 %805  ;;  %v869_v23 = vsub.f32 %v1560_v54, %v1677_v41  ;;  %v870_v54 = vsub.f32 %v1573_v61, %v1683_v45 }
 0x41c   :  { %1152 = vlog2.f32 %v806_v25 }
 0x41d   :  { %v893_v44 = vsel %vm429_vm0, %v877_v6, 0.0  ;;  %v816_v10 = vpop.xlane.xlu0 %815  ;;  %v1141_v0 = vpop.eup %1140 }
 0x41e   :  { %909 = vst [vmem:[%s1859_s6 + $0x10] sm:$0xff] %v893_v44  ;;  %1154 = vlog2.f32 %v816_v10  ;;  %v1143_v63 = vpop.eup %1142  ;;  %v834_v32 = vmul.f32 0.6931472, %v1141_v0 }
 0x41f   :  { %v828_v50 = vmul.f32 0.6931472, %v1143_v63  ;;  %v818_v13 = vpop.xlane.xlu1 %817  ;;  %v867_v63 = vsub.f32 %v1577_v28, %v1687_v53 }
 0x420   :  { %v878_v58 = vsub.f32 %v862_v51, %v834_v32  ;;  %1156 = vlog2.f32 %v818_v13  ;;  %v868_v13 = vsub.f32 %v1593_v8, %v1693_v21 }
 0x421   :  { %v812_v33 = vpop.xlane.xlu0 %811  ;;  %v1145_v18 = vpop.eup %1144  ;;  %v875_v20 = vsub.f32 %v859_v31, %v828_v50 }
 0x422   :  { %1158 = vlog2.f32 %v812_v33  ;;  %v894_v26 = vsel %vm429_vm0, %v878_v58, 0.0  ;;  %v830_v1 = vmul.f32 0.6931472, %v1145_v18  ;;  %v871_v58 = vsub.f32 %v1603_v12, %v1699_v16 }
 0x423   :  { %v1147_v22 = vpop.eup %1146  ;;  %910 = vst [vmem:[%s1859_s6 + $0x18] sm:$0xff] %v894_v26  ;;  %v891_v2 = vsel %vm429_vm0, %v875_v20, 0.0  ;;  %v814_v5 = vpop.xlane.xlu1 %813  ;;  %v873_v26 = vsub.f32 %v1621_v24, %v1711_v9 }
 0x424   :  { %v840_v36 = vmul.f32 0.6931472, %v1147_v22  ;;  %907 = vst [vmem:[%s1859_s6] sm:$0xff] %v891_v2  ;;  %v876_v14 = vsub.f32 %v860_v48, %v830_v1  ;;  %1160 = vlog2.f32 %v814_v5  ;;  %v872_v48 = vsub.f32 %v1617_v7, %v1705_v56 }
 0x425   :  { %v820_v19 = vpop.xlane.xlu0 %819  ;;  %v1149_v62 = vpop.eup %1148 }
 0x426   :  { %v881_v34 = vsub.f32 %v865_v35, %v840_v36  ;;  %1162 = vlog2.f32 %v820_v19  ;;  %v892_v37 = vsel %vm429_vm0, %v876_v14, 0.0  ;;  %v842_v40 = vmul.f32 0.6931472, %v1149_v62 }
 0x427   :  { %v1151_v29 = vpop.eup %1150  ;;  %908 = vst [vmem:[%s1859_s6 + $0x8] sm:$0xff] %v892_v37  ;;  %v874_v36 = vsub.f32 %v1637_v57, %v1717_v46 }
 0x428   :  { %v897_v11 = vsel %vm429_vm0, %v881_v34, 0.0  ;;  %v836_v15 = vmul.f32 0.6931472, %v1151_v29  ;;  %v822_v17 = vpop.xlane.xlu1 %821  ;;  %v882_v39 = vsub.f32 %v866_v38, %v842_v40 }
 0x429   :  { %913 = vst [vmem:[%s1859_s6 + $0x30] sm:$0xff] %v897_v11  ;;  %1164 = vlog2.f32 %v822_v17  ;;  %v824_v55 = vpop.xlane.xlu0 %823  ;;  %v1153_v52 = vpop.eup %1152 }
 0x42a   :  { %v879_v3 = vsub.f32 %v863_v43, %v836_v15  ;;  %1166 = vlog2.f32 %v824_v55  ;;  %v898_v4 = vsel %vm429_vm0, %v882_v39, 0.0  ;;  %v838_v30 = vmul.f32 0.6931472, %v1153_v52 }
 0x42b   :  { %v1155_v42 = vpop.eup %1154  ;;  %914 = vst [vmem:[%s1859_s6 + $0x38] sm:$0xff] %v898_v4 }
 0x42c   :  { %v895_v60 = vsel %vm429_vm0, %v879_v3, 0.0  ;;  %v848_v6 = vmul.f32 0.6931472, %v1155_v42  ;;  %v826_v25 = vpop.xlane.xlu1 %825  ;;  %v880_v47 = vsub.f32 %v864_v27, %v838_v30 }
 0x42d   :  { %911 = vst [vmem:[%s1859_s6 + $0x20] sm:$0xff] %v895_v60  ;;  %1168 = vlog2.f32 %v826_v25  ;;  %v1157_v59 = vpop.eup %1156 }
 0x42e   :  { %v885_v44 = vsub.f32 %v869_v23, %v848_v6  ;;  %v896_v41 = vsel %vm429_vm0, %v880_v47, 0.0  ;;  %v850_v0 = vmul.f32 0.6931472, %v1157_v59 }
 0x42f   :  { %v1159_v10 = vpop.eup %1158  ;;  %912 = vst [vmem:[%s1859_s6 + $0x28] sm:$0xff] %v896_v41 }
 0x430   :  { %v901_v51 = vsel %vm429_vm0, %v885_v44, 0.0  ;;  %v844_v32 = vmul.f32 0.6931472, %v1159_v10  ;;  %v886_v61 = vsub.f32 %v870_v54, %v850_v0 }
 0x431   :  { %917 = vst [vmem:[%s1859_s6 + $0x50] sm:$0xff] %v901_v51  ;;  %v1161_v45 = vpop.eup %1160 }
 0x432   :  { %v883_v31 = vsub.f32 %v867_v63, %v844_v32  ;;  %v902_v28 = vsel %vm429_vm0, %v886_v61, 0.0  ;;  %v846_v53 = vmul.f32 0.6931472, %v1161_v45 }
 0x433   :  { %v1163_v50 = vpop.eup %1162  ;;  %918 = vst [vmem:[%s1859_s6 + $0x58] sm:$0xff] %v902_v28 }
 0x434   :  { %v899_v33 = vsel %vm429_vm0, %v883_v31, 0.0  ;;  %v852_v18 = vmul.f32 0.6931472, %v1163_v50  ;;  %v884_v8 = vsub.f32 %v868_v13, %v846_v53 }
 0x435   :  { %915 = vst [vmem:[%s1859_s6 + $0x40] sm:$0xff] %v899_v33 }
 0x436   :  { %v1165_v21 = vpop.eup %1164  ;;  %v887_v20 = vsub.f32 %v871_v58, %v852_v18  ;;  %v900_v12 = vsel %vm429_vm0, %v884_v8, 0.0 }
 0x437   :  { %v1167_v22 = vpop.eup %1166  ;;  %v854_v16 = vmul.f32 0.6931472, %v1165_v21  ;;  %916 = vst [vmem:[%s1859_s6 + $0x48] sm:$0xff] %v900_v12 }
 0x438   :  { %v903_v1 = vsel %vm429_vm0, %v887_v20, 0.0  ;;  %v856_v35 = vmul.f32 0.6931472, %v1167_v22 }
 0x439   :  { %919 = vst [vmem:[%s1859_s6 + $0x60] sm:$0xff] %v903_v1  ;;  %v888_v7 = vsub.f32 %v872_v48, %v854_v16 }
 0x43a   :  { %v1169_v56 = vpop.eup %1168  ;;  %v889_v2 = vsub.f32 %v873_v26, %v856_v35 }
 0x43b   :  { %v904_v24 = vsel %vm429_vm0, %v888_v7, 0.0  ;;  %v858_v9 = vmul.f32 0.6931472, %v1169_v56 }
 0x43c   :  { %920 = vst [vmem:[%s1859_s6 + $0x68] sm:$0xff] %v904_v24  ;;  %v905_v5 = vsel %vm429_vm0, %v889_v2, 0.0 }
 0x43d   :  { %921 = vst [vmem:[%s1859_s6 + $0x70] sm:$0xff] %v905_v5  ;;  %v890_v14 = vsub.f32 %v874_v36, %v858_v9 }
 0x43f   :  { %v906_v19 = vsel %vm429_vm0, %v890_v14, 0.0 }
 0x440   :  { %922 = vst [vmem:[%s1859_s6 + $0x78] sm:$0xff] %v906_v19 }

</bundles_post_ra>
